<compile_context>
chip_gen: v5e
topology: v5e:2x2
jax: 0.10.0
libtpu: 0.0.40
codegen_flags: <defaults>
</compile_context>

<pallas_src>
import functools
import math

import jax
import jax.numpy as jnp
from jax import lax
from jax.experimental import pallas as pl
from jax.experimental.pallas import tpu as pltpu


# Default tile sizes (multiples of 128 -> lane-dense stores); clamped to the
# full dimension when the array is smaller (toy config).
TILE_IN = 512        # Din (reduction) tile
TILE_OUT = 512       # Dout / vocab tile
TILE_HIDDEN = 512    # FFN hidden tile

_VMEM_LIMIT = 48 * 1024 * 1024
# x (N, K) contracted with w (M, K) along K  ==  x @ w.T  (nn.Linear layout).
_DOT_T = (((1,), (1,)), ((), ()))


def _cparams(*semantics):
    return pltpu.CompilerParams(
        dimension_semantics=tuple(semantics),
        vmem_limit_bytes=_VMEM_LIMIT,
    )


# ----------------------------- Pallas kernels ------------------------------


def _qkv_rope_kernel(h_ref, nw_ref, wq_ref, wk_ref, wv_ref, cos_ref, sin_ref,
                     q_ref, k_ref, v_ref,
                     accq, acck, accv, accss,
                     *, eps, dim, n_q_heads, n_kv_heads, head_dim):
    """Fused RMSNorm + {wq, wk, wv} projections + RoPE.

    Grid: (Din tiles,) -- reduction.  rmsnorm's per-row 1/rms is factored out
    of the matmul (it is a row scalar), so we accumulate (gamma * x) @ W^T and
    sum(x^2) per tile and apply rsqrt + RoPE in the finalize step.
    """
    kstep = pl.program_id(0)
    half = head_dim // 2

    @pl.when(kstep == 0)
    def _init():
        accq[...] = jnp.zeros_like(accq)
        acck[...] = jnp.zeros_like(acck)
        accv[...] = jnp.zeros_like(accv)
        accss[...] = jnp.zeros_like(accss)

    x = h_ref[...].astype(jnp.float32)                               # (B, tk)
    accss[...] += jnp.sum(x * x, axis=-1, keepdims=True)
    xw = (x * nw_ref[...].astype(jnp.float32)).astype(wq_ref.dtype)  # bf16
    accq[...] += lax.dot_general(xw, wq_ref[...], _DOT_T,
                                 preferred_element_type=jnp.float32)
    acck[...] += lax.dot_general(xw, wk_ref[...], _DOT_T,
                                 preferred_element_type=jnp.float32)
    accv[...] += lax.dot_general(xw, wv_ref[...], _DOT_T,
                                 preferred_element_type=jnp.float32)

    @pl.when(kstep == pl.num_programs(0) - 1)
    def _finalize():
        inv = lax.rsqrt(accss[...] / dim + eps)                      # (B, 1)
        q = accq[...] * inv
        kk = acck[...] * inv
        v_ref[...] = (accv[...] * inv).astype(v_ref.dtype)

        c = cos_ref[...].astype(jnp.float32)                         # (1, half)
        s = sin_ref[...].astype(jnp.float32)

        # Heads are stored as (real half | imag half) thanks to the init-time
        # row permutation of wq / wk, so RoPE is plain static lane slices.
        for hh in range(n_q_heads):
            lo = hh * head_dim
            r = q[:, lo:lo + half]
            i = q[:, lo + half:lo + head_dim]
            q_ref[:, lo:lo + half] = (r * c - i * s).astype(q_ref.dtype)
            q_ref[:, lo + half:lo + head_dim] = (r * s + i * c).astype(q_ref.dtype)
        for hh in range(n_kv_heads):
            lo = hh * head_dim
            r = kk[:, lo:lo + half]
            i = kk[:, lo + half:lo + head_dim]
            k_ref[:, lo:lo + half] = (r * c - i * s).astype(k_ref.dtype)
            k_ref[:, lo + half:lo + head_dim] = (r * s + i * c).astype(k_ref.dtype)


def _attention_kernel(q_ref, k_ref, v_ref, o_ref, *, scale):
    """Decode attention for one batch element (all heads).

    q: (1, H, hd); k/v: (1, KV, T, hd).  Scores are computed on the MXU with T
    on the lane axis; the KV block is loaded once and reused for the n_rep
    query heads of each KV head (query head j -> kv head j // n_rep).
    """
    _, n_q, _ = q_ref.shape
    _, n_kv, _, _ = k_ref.shape
    n_rep = n_q // n_kv
    for kv in range(n_kv):
        qh = q_ref[0, kv * n_rep:(kv + 1) * n_rep, :]                # (n_rep, hd)
        kh = k_ref[0, kv, :, :]                                      # (T, hd)
        vh = v_ref[0, kv, :, :]
        s = lax.dot_general(qh, kh, _DOT_T,
                            preferred_element_type=jnp.float32) * scale
        m = jnp.max(s, axis=-1, keepdims=True)
        p = jnp.exp(s - m)
        p = p * pl.reciprocal(jnp.sum(p, axis=-1, keepdims=True), approx=True)
        o = lax.dot_general(p.astype(vh.dtype), vh, (((1,), (0,)), ((), ())),
                            preferred_element_type=jnp.float32)      # (n_rep, hd)
        o_ref[0, kv * n_rep:(kv + 1) * n_rep, :] = o.astype(o_ref.dtype)


def _linear_kernel(x_ref, w_ref, o_ref, acc_ref):
    k = pl.program_id(1)

    @pl.when(k == 0)
    def _init():
        acc_ref[...] = jnp.zeros_like(acc_ref)

    acc_ref[...] += lax.dot_general(x_ref[...].astype(w_ref.dtype), w_ref[...],
                                    _DOT_T, preferred_element_type=jnp.float32)

    @pl.when(k == pl.num_programs(1) - 1)
    def _finalize():
        o_ref[...] = acc_ref[...].astype(o_ref.dtype)


def _linear_residual_kernel(x_ref, w_ref, res_ref, o_ref, acc_ref):
    k = pl.program_id(1)

    @pl.when(k == 0)
    def _init():
        acc_ref[...] = jnp.zeros_like(acc_ref)

    acc_ref[...] += lax.dot_general(x_ref[...].astype(w_ref.dtype), w_ref[...],
                                    _DOT_T, preferred_element_type=jnp.float32)

    @pl.when(k == pl.num_programs(1) - 1)
    def _finalize():
        o_ref[...] = (acc_ref[...] + res_ref[...].astype(jnp.float32)).astype(o_ref.dtype)


def _ffn_kernel(h_ref, nw_ref, w1_ref, w3_ref, w2_ref, o_ref, acc_ref, xn_ref, *, eps):
    """Fused RMSNorm + SwiGLU ( w2( silu(w1 x) * (w3 x) ) ) + residual add.

    Grid: (hidden tiles,) -- reduction over the hidden dim for the w2 matmul.
    """
    j = pl.program_id(0)

    @pl.when(j == 0)
    def _init():
        x = h_ref[...].astype(jnp.float32)
        inv = lax.rsqrt(jnp.mean(x * x, axis=-1, keepdims=True) + eps)
        xn_ref[...] = (x * inv * nw_ref[...].astype(jnp.float32)).astype(xn_ref.dtype)
        acc_ref[...] = jnp.zeros_like(acc_ref)

    xn = xn_ref[...]
    h1 = lax.dot_general(xn, w1_ref[...], _DOT_T,
                         preferred_element_type=jnp.float32)          # (B, th)
    h3 = lax.dot_general(xn, w3_ref[...], _DOT_T,
                         preferred_element_type=jnp.float32)
    g = (h1 * (1.0 / (1.0 + jnp.exp(-h1)))) * h3                      # SiLU * gate
    acc_ref[...] += lax.dot_general(g.astype(w2_ref.dtype), w2_ref[...], _DOT_T,
                                    preferred_element_type=jnp.float32)

    @pl.when(j == pl.num_programs(0) - 1)
    def _finalize():
        o_ref[...] = (acc_ref[...] + h_ref[...].astype(jnp.float32)).astype(o_ref.dtype)


def _rmsnorm_kernel(x_ref, w_ref, o_ref, *, eps):
    x = x_ref[...].astype(jnp.float32)
    inv = lax.rsqrt(jnp.mean(x * x, axis=-1, keepdims=True) + eps)
    o_ref[...] = (x * inv * w_ref[...].astype(jnp.float32)).astype(o_ref.dtype)


# ----------------------------- thin wrappers --------------------------------


def qkv_rope(h, norm_w, wq, wk, wv, cos_row, sin_row, *,
             eps, n_q_heads, n_kv_heads, head_dim, tile_in=TILE_IN):
    B, dim = h.shape
    dq = wq.shape[0]
    dkv = wk.shape[0]
    tk = min(tile_in, dim)
    grid = (pl.cdiv(dim, tk),)
    kernel = functools.partial(
        _qkv_rope_kernel, eps=eps, dim=dim,
        n_q_heads=n_q_heads, n_kv_heads=n_kv_heads, head_dim=head_dim)
    return pl.pallas_call(
        kernel,
        out_shape=(
            jax.ShapeDtypeStruct((B, dq), jnp.bfloat16),
            jax.ShapeDtypeStruct((B, dkv), jnp.bfloat16),
            jax.ShapeDtypeStruct((B, dkv), jnp.bfloat16),
        ),
        grid_spec=pltpu.PrefetchScalarGridSpec(
            num_scalar_prefetch=0,
            grid=grid,
            in_specs=[
                pl.BlockSpec((B, tk), lambda k: (0, k)),      # h (residual)
                pl.BlockSpec((1, tk), lambda k: (0, k)),      # attn_norm gamma
                pl.BlockSpec((dq, tk), lambda k: (0, k)),     # wq
                pl.BlockSpec((dkv, tk), lambda k: (0, k)),    # wk
                pl.BlockSpec((dkv, tk), lambda k: (0, k)),    # wv
                pl.BlockSpec((1, head_dim // 2), lambda k: (0, 0)),   # cos
                pl.BlockSpec((1, head_dim // 2), lambda k: (0, 0)),   # sin
            ],
            out_specs=[
                pl.BlockSpec((B, dq), lambda k: (0, 0)),
                pl.BlockSpec((B, dkv), lambda k: (0, 0)),
                pl.BlockSpec((B, dkv), lambda k: (0, 0)),
            ],
            scratch_shapes=[
                pltpu.VMEM((B, dq), jnp.float32),
                pltpu.VMEM((B, dkv), jnp.float32),
                pltpu.VMEM((B, dkv), jnp.float32),
                pltpu.VMEM((B, 1), jnp.float32),
            ],
        ),
        compiler_params=_cparams("arbitrary"),
    )(h, norm_w.reshape(1, dim), wq, wk, wv, cos_row, sin_row)


def attention(q, keys, vals, *, scale):
    B, H, hd = q.shape
    _, KV, T, _ = keys.shape
    return pl.pallas_call(
        functools.partial(_attention_kernel, scale=scale),
        out_shape=jax.ShapeDtypeStruct((B, H, hd), q.dtype),
        grid_spec=pltpu.PrefetchScalarGridSpec(
            num_scalar_prefetch=0,
            grid=(B,),
            in_specs=[
                pl.BlockSpec((1, H, hd), lambda b: (b, 0, 0)),
                pl.BlockSpec((1, KV, T, hd), lambda b: (b, 0, 0, 0)),
                pl.BlockSpec((1, KV, T, hd), lambda b: (b, 0, 0, 0)),
            ],
            out_specs=pl.BlockSpec((1, H, hd), lambda b: (b, 0, 0)),
        ),
        compiler_params=_cparams("parallel"),
    )(q, keys, vals)
    # TODO(synk): for long contexts the T axis should be tiled flash-style.


def linear(x, w, *, residual=None, out_dtype=None,
           tile_out=TILE_OUT, tile_in=TILE_IN):
    """y = x @ w.T (+ residual).  w keeps nn.Linear (Dout, Din) layout."""
    N, din = x.shape
    dout = w.shape[0]
    tn = min(tile_out, dout)
    tk = min(tile_in, din)
    grid = (pl.cdiv(dout, tn), pl.cdiv(din, tk))
    out_dtype = out_dtype if out_dtype is not None else x.dtype

    in_specs = [
        pl.BlockSpec((N, tk), lambda j, k: (0, k)),
        pl.BlockSpec((tn, tk), lambda j, k: (j, k)),
    ]
    args = [x, w]
    if residual is not None:
        in_specs.append(pl.BlockSpec((N, tn), lambda j, k: (0, j)))
        args.append(residual)
        kernel = _linear_residual_kernel
    else:
        kernel = _linear_kernel

    return pl.pallas_call(
        kernel,
        out_shape=jax.ShapeDtypeStruct((N, dout), out_dtype),
        grid_spec=pltpu.PrefetchScalarGridSpec(
            num_scalar_prefetch=0,
            grid=grid,
            in_specs=in_specs,
            out_specs=pl.BlockSpec((N, tn), lambda j, k: (0, j)),
            scratch_shapes=[pltpu.VMEM((N, tn), jnp.float32)],
        ),
        compiler_params=_cparams("parallel", "arbitrary"),
    )(*args)


def feed_forward(h, norm_w, w1, w2, w3, *, eps, tile_h=TILE_HIDDEN):
    B, dim = h.shape
    hidden = w1.shape[0]
    th = min(tile_h, hidden)
    grid = (pl.cdiv(hidden, th),)
    return pl.pallas_call(
        functools.partial(_ffn_kernel, eps=eps),
        out_shape=jax.ShapeDtypeStruct((B, dim), h.dtype),
        grid_spec=pltpu.PrefetchScalarGridSpec(
            num_scalar_prefetch=0,
            grid=grid,
            in_specs=[
                pl.BlockSpec((B, dim), lambda j: (0, 0)),     # h (norm in + residual)
                pl.BlockSpec((1, dim), lambda j: (0, 0)),     # ffn_norm gamma
                pl.BlockSpec((th, dim), lambda j: (j, 0)),    # w1
                pl.BlockSpec((th, dim), lambda j: (j, 0)),    # w3
                pl.BlockSpec((dim, th), lambda j: (0, j)),    # w2
            ],
            out_specs=pl.BlockSpec((B, dim), lambda j: (0, 0)),
            scratch_shapes=[pltpu.VMEM((B, dim), jnp.float32),
                            pltpu.VMEM((B, dim), jnp.bfloat16)],
        ),
        compiler_params=_cparams("arbitrary"),
    )(h, norm_w.reshape(1, dim), w1, w3, w2)


def rmsnorm(x, w, eps, out_dtype=jnp.bfloat16):
    B, D = x.shape
    return pl.pallas_call(
        functools.partial(_rmsnorm_kernel, eps=eps),
        out_shape=jax.ShapeDtypeStruct((B, D), out_dtype),
    )(x, w.reshape(1, D))


# ----------------------------- model set-up ---------------------------------


def compute_hidden_dim(dim, multiple_of, ffn_dim_multiplier=None):
    hidden = 4 * dim
    hidden = int(2 * hidden / 3)
    if ffn_dim_multiplier is not None:
        hidden = int(ffn_dim_multiplier * hidden)
    hidden = multiple_of * ((hidden + multiple_of - 1) // multiple_of)
    return hidden


def precompute_freqs_cos_sin(head_dim, seq_len, theta=10000.0):
    assert head_dim % 2 == 0
    inv = 1.0 / (theta ** (jnp.arange(0, head_dim, 2, dtype=jnp.float32) / head_dim))
    m = jnp.arange(seq_len, dtype=jnp.float32)
    freqs = jnp.outer(m, inv)                      # (seq_len, head_dim // 2)
    return jnp.cos(freqs), jnp.sin(freqs)


def _rope_permute_rows(w, n_heads, head_dim):
    """Reorder wq/wk output rows so each head stores (real half | imag half).

    Applied identically to q and k, so per-head q.k dot products (and the
    logits) are unchanged; it just makes the in-kernel RoPE static lane slices.
    """
    per_head = jnp.concatenate(
        [jnp.arange(0, head_dim, 2), jnp.arange(1, head_dim, 2)])
    idx = (jnp.arange(n_heads)[:, None] * head_dim + per_head[None, :]).reshape(-1)
    return w[idx, :]


def init_params(key, cfg):
    dim = cfg["dim"]
    H, KV = cfg["n_heads"], cfg["n_kv_heads"]
    hd = dim // H
    hidden = compute_hidden_dim(dim, cfg["multiple_of"], cfg["ffn_dim_multiplier"])
    vocab = cfg["vocab_size"]

    def dense(k, shape):
        return (0.02 * jax.random.normal(k, shape, dtype=jnp.float32)).astype(jnp.bfloat16)

    keys = jax.random.split(key, 2 + 7 * cfg["n_layers"])
    ki = iter(keys)
    params = {
        "tok_emb": dense(next(ki), (vocab, dim)),
        "norm": jnp.ones((dim,), jnp.float32),
        "output": dense(next(ki), (vocab, dim)),
        "layers": [],
    }
    for _ in range(cfg["n_layers"]):
        wq = _rope_permute_rows(dense(next(ki), (H * hd, dim)), H, hd)
        wk = _rope_permute_rows(dense(next(ki), (KV * hd, dim)), KV, hd)
        params["layers"].append({
            "wq": wq,
            "wk": wk,
            "wv": dense(next(ki), (KV * hd, dim)),
            "wo": dense(next(ki), (dim, H * hd)),
            "w1": dense(next(ki), (hidden, dim)),
            "w2": dense(next(ki), (dim, hidden)),
            "w3": dense(next(ki), (hidden, dim)),
            "attn_norm": jnp.ones((dim,), jnp.float32),
            "ffn_norm": jnp.ones((dim,), jnp.float32),
        })
    cos, sin = precompute_freqs_cos_sin(hd, cfg["max_seq_len"] * 2)
    params["freqs_cos"] = cos
    params["freqs_sin"] = sin
    return params


# ----------------------------- forward pass ---------------------------------


def transformer_forward(params, tokens, start_pos, cache_k, cache_v, cfg):
    B, S = tokens.shape
    assert S == 1, "Only one token at a time can be processed"
    dim = cfg["dim"]
    H, KV = cfg["n_heads"], cfg["n_kv_heads"]
    hd = dim // H
    eps = cfg["norm_eps"]
    scale = 1.0 / math.sqrt(hd)
    T = start_pos + S

    # token embedding gather (glue); residual stream kept in f32.
    h = params["tok_emb"][tokens[:, 0]].astype(jnp.float32)          # (B, dim)

    cos_row = params["freqs_cos"][start_pos].reshape(1, hd // 2)
    sin_row = params["freqs_sin"][start_pos].reshape(1, hd // 2)

    for li, lp in enumerate(params["layers"]):
        # --- fused rmsnorm + qkv projections + RoPE ---
        xq, xk, xv = qkv_rope(h, lp["attn_norm"], lp["wq"], lp["wk"], lp["wv"],
                              cos_row, sin_row, eps=eps,
                              n_q_heads=H, n_kv_heads=KV, head_dim=hd)

        # KV-cache update (static slot; cache buffers are donated -> in place).
        cache_k = cache_k.at[li, :B, :, start_pos, :].set(xk.reshape(B, KV, hd))
        cache_v = cache_v.at[li, :B, :, start_pos, :].set(xv.reshape(B, KV, hd))

        keys = cache_k[li, :B, :, :T, :]                             # (B, KV, T, hd)
        vals = cache_v[li, :B, :, :T, :]

        attn = attention(xq.reshape(B, H, hd), keys, vals, scale=scale)
        attn = attn.reshape(B, H * hd)

        # --- wo projection fused with the residual add ---
        h = linear(attn, lp["wo"], residual=h, out_dtype=jnp.float32)

        # --- fused rmsnorm + SwiGLU + residual add ---
        h = feed_forward(h, lp["ffn_norm"], lp["w1"], lp["w2"], lp["w3"], eps=eps)

    hn = rmsnorm(h, params["norm"], eps)                              # (B, dim) bf16
    logits = linear(hn, params["output"], out_dtype=jnp.float32)      # (B, vocab)
    return logits.reshape(B, S, -1), cache_k, cache_v


def make_forward(cfg):
    @functools.partial(jax.jit, static_argnames=("start_pos",), donate_argnums=(2, 3))
    def fwd(params, tokens, cache_k, cache_v, *, start_pos):
        return transformer_forward(params, tokens, start_pos, cache_k, cache_v, cfg)
    return fwd


# ----------------------------------- main ------------------------------------


if __name__ == "__main__":
    cfg = dict(
        dim=32,
        n_layers=2,
        n_heads=4,
        n_kv_heads=2,
        vocab_size=64,
        multiple_of=16,
        ffn_dim_multiplier=None,
        norm_eps=1e-5,
        max_batch_size=2,
        max_seq_len=16,
    )
    key = jax.random.PRNGKey(0)
    pkey, tkey = jax.random.split(key)
    params = init_params(pkey, cfg)

    B = 2
    tokens = jax.random.randint(tkey, (B, 1), 0, cfg["vocab_size"], dtype=jnp.int32)
    start_pos = 3   # earlier cache slots are zero, matching a fresh module

    hd = cfg["dim"] // cfg["n_heads"]
    cache_shape = (cfg["n_layers"], cfg["max_batch_size"], cfg["n_kv_heads"],
                   cfg["max_seq_len"], hd)
    cache_k = jnp.zeros(cache_shape, jnp.bfloat16)
    cache_v = jnp.zeros(cache_shape, jnp.bfloat16)

    fwd = make_forward(cfg)
    logits, cache_k, cache_v = fwd(params, tokens, cache_k, cache_v,
                                   start_pos=start_pos)
    jax.block_until_ready(logits)
    assert logits.shape == (B, 1, cfg["vocab_size"])
    assert logits.dtype == jnp.float32
    print("KERNEL_OK")
</pallas_src>

<mosaic_0001>
module attributes {stable_mosaic.version = 11 : i64} {
  func.func @_qkv_rope_kernel(%arg0: i32, %arg1: memref<2x32xf32, #tpu.memory_space<vmem>>, %arg2: memref<1x32xf32, #tpu.memory_space<vmem>>, %arg3: memref<32x32xbf16, #tpu.memory_space<vmem>>, %arg4: memref<16x32xbf16, #tpu.memory_space<vmem>>, %arg5: memref<16x32xbf16, #tpu.memory_space<vmem>>, %arg6: memref<1x4xf32, #tpu.memory_space<vmem>>, %arg7: memref<1x4xf32, #tpu.memory_space<vmem>>, %arg8: memref<2x32xbf16, #tpu.memory_space<vmem>>, %arg9: memref<2x16xbf16, #tpu.memory_space<vmem>>, %arg10: memref<2x16xbf16, #tpu.memory_space<vmem>>, %arg11: memref<2x32xf32, #tpu.memory_space<vmem>>, %arg12: memref<2x16xf32, #tpu.memory_space<vmem>>, %arg13: memref<2x16xf32, #tpu.memory_space<vmem>>, %arg14: memref<2x1xf32, #tpu.memory_space<vmem>>) attributes {dimension_semantics = [#tpu.dimension_semantics<arbitrary>], iteration_bounds = array<i64: 1>, scalar_prefetch = 0 : i64, scratch_operands = 4 : i64, tpu.core_type = #tpu.core_type<tc>, window_params = [{transform_indices = @transform_0, window_bounds = array<i64: 2, 32>}, {transform_indices = @transform_1, window_bounds = array<i64: 1, 32>}, {transform_indices = @transform_2, window_bounds = array<i64: 32, 32>}, {transform_indices = @transform_3, window_bounds = array<i64: 16, 32>}, {transform_indices = @transform_4, window_bounds = array<i64: 16, 32>}, {pipeline_mode = #tpu.pipeline_mode<synchronous>, transform_indices = @transform_5, window_bounds = array<i64: 1, 4>}, {pipeline_mode = #tpu.pipeline_mode<synchronous>, transform_indices = @transform_6, window_bounds = array<i64: 1, 4>}, {pipeline_mode = #tpu.pipeline_mode<synchronous>, transform_indices = @transform_7, window_bounds = array<i64: 2, 32>}, {pipeline_mode = #tpu.pipeline_mode<synchronous>, transform_indices = @transform_8, window_bounds = array<i64: 2, 16>}, {pipeline_mode = #tpu.pipeline_mode<synchronous>, transform_indices = @transform_9, window_bounds = array<i64: 2, 16>}]} {
    %c0_i32 = arith.constant 0 : i32
    %0 = arith.cmpi eq, %arg0, %c0_i32 : i32
    %1 = arith.extui %0 : i1 to i32
    %c0_i32_0 = arith.constant 0 : i32
    %2 = arith.cmpi ne, %1, %c0_i32_0 : i32
    scf.if %2 {
      %cst_31 = arith.constant 0.000000e+00 : f32
      %32 = vector.broadcast %cst_31 : f32 to vector<2x32xf32>
      %c0_32 = arith.constant 0 : index
      %c0_33 = arith.constant 0 : index
      %33 = vector.load %arg11[%c0_32, %c0_33] : memref<2x32xf32, #tpu.memory_space<vmem>>, vector<2x32xf32>
      tpu.vector_store %arg11[%c0_32, %c0_33], %32 {strides = array<i32>} : memref<2x32xf32, #tpu.memory_space<vmem>>, vector<2x32xf32>,
      %cst_34 = arith.constant 0.000000e+00 : f32
      %34 = vector.broadcast %cst_34 : f32 to vector<2x16xf32>
      %c0_35 = arith.constant 0 : index
      %c0_36 = arith.constant 0 : index
      %35 = vector.load %arg12[%c0_35, %c0_36] : memref<2x16xf32, #tpu.memory_space<vmem>>, vector<2x16xf32>
      tpu.vector_store %arg12[%c0_35, %c0_36], %34 {strides = array<i32>} : memref<2x16xf32, #tpu.memory_space<vmem>>, vector<2x16xf32>,
      %cst_37 = arith.constant 0.000000e+00 : f32
      %36 = vector.broadcast %cst_37 : f32 to vector<2x16xf32>
      %c0_38 = arith.constant 0 : index
      %c0_39 = arith.constant 0 : index
      %37 = vector.load %arg13[%c0_38, %c0_39] : memref<2x16xf32, #tpu.memory_space<vmem>>, vector<2x16xf32>
      tpu.vector_store %arg13[%c0_38, %c0_39], %36 {strides = array<i32>} : memref<2x16xf32, #tpu.memory_space<vmem>>, vector<2x16xf32>,
      %cst_40 = arith.constant 0.000000e+00 : f32
      %38 = vector.broadcast %cst_40 : f32 to vector<2x1xf32>
      %c0_41 = arith.constant 0 : index
      %c0_42 = arith.constant 0 : index
      %39 = vector.load %arg14[%c0_41, %c0_42] : memref<2x1xf32, #tpu.memory_space<vmem>>, vector<2x1xf32>
      tpu.vector_store %arg14[%c0_41, %c0_42], %38 {strides = array<i32>} : memref<2x1xf32, #tpu.memory_space<vmem>>, vector<2x1xf32>,
    } else {
    }
    %c0 = arith.constant 0 : index
    %c0_1 = arith.constant 0 : index
    %3 = vector.load %arg1[%c0, %c0_1] : memref<2x32xf32, #tpu.memory_space<vmem>>, vector<2x32xf32>
    %c0_2 = arith.constant 0 : index
    %c0_3 = arith.constant 0 : index
    %4 = vector.load %arg14[%c0_2, %c0_3] : memref<2x1xf32, #tpu.memory_space<vmem>>, vector<2x1xf32>
    %5 = arith.mulf %3, %3 : vector<2x32xf32>
    %cst = arith.constant dense<0.000000e+00> : vector<2xf32>
    %6 = vector.multi_reduction <add>, %5, %cst [1] : vector<2x32xf32> to vector<2xf32>
    %7 = vector.shape_cast %6 : vector<2xf32> to vector<2x1xf32>
    %8 = arith.addf %4, %7 : vector<2x1xf32>
    %c0_4 = arith.constant 0 : index
    %c0_5 = arith.constant 0 : index
    %9 = vector.load %arg14[%c0_4, %c0_5] : memref<2x1xf32, #tpu.memory_space<vmem>>, vector<2x1xf32>
    tpu.vector_store %arg14[%c0_4, %c0_5], %8 {strides = array<i32>} : memref<2x1xf32, #tpu.memory_space<vmem>>, vector<2x1xf32>,
    %c0_6 = arith.constant 0 : index
    %c0_7 = arith.constant 0 : index
    %10 = vector.load %arg2[%c0_6, %c0_7] : memref<1x32xf32, #tpu.memory_space<vmem>>, vector<1x32xf32>
    %11 = vector.broadcast %10 : vector<1x32xf32> to vector<2x32xf32>
    %12 = arith.mulf %3, %11 : vector<2x32xf32>
    %13 = arith.truncf %12 : vector<2x32xf32> to vector<2x32xbf16>
    %c0_8 = arith.constant 0 : index
    %c0_9 = arith.constant 0 : index
    %14 = vector.load %arg11[%c0_8, %c0_9] : memref<2x32xf32, #tpu.memory_space<vmem>>, vector<2x32xf32>
    %c0_10 = arith.constant 0 : index
    %c0_11 = arith.constant 0 : index
    %15 = vector.load %arg3[%c0_10, %c0_11] : memref<32x32xbf16, #tpu.memory_space<vmem>>, vector<32x32xbf16>
    %cst_12 = arith.constant dense<0.000000e+00> : vector<2x32xf32>
    %16 = tpu.matmul %13, %15, %cst_12 {dimension_numbers = #tpu.dot_dimension_numbers<[1], [1], [0], [0], [0, 0, 1, 0], [], []>} : vector<2x32xbf16>, vector<32x32xbf16>, vector<2x32xf32> -> vector<2x32xf32>
    %17 = arith.addf %14, %16 : vector<2x32xf32>
    %c0_13 = arith.constant 0 : index
    %c0_14 = arith.constant 0 : index
    %18 = vector.load %arg11[%c0_13, %c0_14] : memref<2x32xf32, #tpu.memory_space<vmem>>, vector<2x32xf32>
    tpu.vector_store %arg11[%c0_13, %c0_14], %17 {strides = array<i32>} : memref<2x32xf32, #tpu.memory_space<vmem>>, vector<2x32xf32>,
    %c0_15 = arith.constant 0 : index
    %c0_16 = arith.constant 0 : index
    %19 = vector.load %arg12[%c0_15, %c0_16] : memref<2x16xf32, #tpu.memory_space<vmem>>, vector<2x16xf32>
    %c0_17 = arith.constant 0 : index
    %c0_18 = arith.constant 0 : index
    %20 = vector.load %arg4[%c0_17, %c0_18] : memref<16x32xbf16, #tpu.memory_space<vmem>>, vector<16x32xbf16>
    %cst_19 = arith.constant dense<0.000000e+00> : vector<2x16xf32>
    %21 = tpu.matmul %13, %20, %cst_19 {dimension_numbers = #tpu.dot_dimension_numbers<[1], [1], [0], [0], [0, 0, 1, 0], [], []>} : vector<2x32xbf16>, vector<16x32xbf16>, vector<2x16xf32> -> vector<2x16xf32>
    %22 = arith.addf %19, %21 : vector<2x16xf32>
    %c0_20 = arith.constant 0 : index
    %c0_21 = arith.constant 0 : index
    %23 = vector.load %arg12[%c0_20, %c0_21] : memref<2x16xf32, #tpu.memory_space<vmem>>, vector<2x16xf32>
    tpu.vector_store %arg12[%c0_20, %c0_21], %22 {strides = array<i32>} : memref<2x16xf32, #tpu.memory_space<vmem>>, vector<2x16xf32>,
    %c0_22 = arith.constant 0 : index
    %c0_23 = arith.constant 0 : index
    %24 = vector.load %arg13[%c0_22, %c0_23] : memref<2x16xf32, #tpu.memory_space<vmem>>, vector<2x16xf32>
    %c0_24 = arith.constant 0 : index
    %c0_25 = arith.constant 0 : index
    %25 = vector.load %arg5[%c0_24, %c0_25] : memref<16x32xbf16, #tpu.memory_space<vmem>>, vector<16x32xbf16>
    %cst_26 = arith.constant dense<0.000000e+00> : vector<2x16xf32>
    %26 = tpu.matmul %13, %25, %cst_26 {dimension_numbers = #tpu.dot_dimension_numbers<[1], [1], [0], [0], [0, 0, 1, 0], [], []>} : vector<2x32xbf16>, vector<16x32xbf16>, vector<2x16xf32> -> vector<2x16xf32>
    %27 = arith.addf %24, %26 : vector<2x16xf32>
    %c0_27 = arith.constant 0 : index
    %c0_28 = arith.constant 0 : index
    %28 = vector.load %arg13[%c0_27, %c0_28] : memref<2x16xf32, #tpu.memory_space<vmem>>, vector<2x16xf32>
    tpu.vector_store %arg13[%c0_27, %c0_28], %27 {strides = array<i32>} : memref<2x16xf32, #tpu.memory_space<vmem>>, vector<2x16xf32>,
    %c0_i32_29 = arith.constant 0 : i32
    %29 = arith.cmpi eq, %arg0, %c0_i32_29 : i32
    %30 = arith.extui %29 : i1 to i32
    %c0_i32_30 = arith.constant 0 : i32
    %31 = arith.cmpi ne, %30, %c0_i32_30 : i32
    scf.if %31 {
      %c0_31 = arith.constant 0 : index
      %c0_32 = arith.constant 0 : index
      %32 = vector.load %arg14[%c0_31, %c0_32] : memref<2x1xf32, #tpu.memory_space<vmem>>, vector<2x1xf32>
      %cst_33 = arith.constant 3.200000e+01 : f32
      %33 = vector.broadcast %cst_33 : f32 to vector<2x1xf32>
      %34 = arith.divf %32, %33 : vector<2x1xf32>
      %cst_34 = arith.constant 9.99999974E-6 : f32
      %35 = vector.broadcast %cst_34 : f32 to vector<2x1xf32>
      %36 = arith.addf %34, %35 : vector<2x1xf32>
      %37 = math.rsqrt %36 : vector<2x1xf32>
      %c0_35 = arith.constant 0 : index
      %c0_36 = arith.constant 0 : index
      %38 = vector.load %arg11[%c0_35, %c0_36] : memref<2x32xf32, #tpu.memory_space<vmem>>, vector<2x32xf32>
      %39 = vector.broadcast %37 : vector<2x1xf32> to vector<2x32xf32>
      %40 = arith.mulf %38, %39 : vector<2x32xf32>
      %c0_37 = arith.constant 0 : index
      %c0_38 = arith.constant 0 : index
      %41 = vector.load %arg12[%c0_37, %c0_38] : memref<2x16xf32, #tpu.memory_space<vmem>>, vector<2x16xf32>
      %42 = vector.broadcast %37 : vector<2x1xf32> to vector<2x16xf32>
      %43 = arith.mulf %41, %42 : vector<2x16xf32>
      %c0_39 = arith.constant 0 : index
      %c0_40 = arith.constant 0 : index
      %44 = vector.load %arg13[%c0_39, %c0_40] : memref<2x16xf32, #tpu.memory_space<vmem>>, vector<2x16xf32>
      %45 = vector.broadcast %37 : vector<2x1xf32> to vector<2x16xf32>
      %46 = arith.mulf %44, %45 : vector<2x16xf32>
      %47 = arith.truncf %46 : vector<2x16xf32> to vector<2x16xbf16>
      %c0_41 = arith.constant 0 : index
      %c0_42 = arith.constant 0 : index
      %48 = vector.load %arg10[%c0_41, %c0_42] : memref<2x16xbf16, #tpu.memory_space<vmem>>, vector<2x16xbf16>
      tpu.vector_store %arg10[%c0_41, %c0_42], %47 {strides = array<i32>} : memref<2x16xbf16, #tpu.memory_space<vmem>>, vector<2x16xbf16>,
      %c0_43 = arith.constant 0 : index
      %c0_44 = arith.constant 0 : index
      %49 = vector.load %arg6[%c0_43, %c0_44] : memref<1x4xf32, #tpu.memory_space<vmem>>, vector<1x4xf32>
      %c0_45 = arith.constant 0 : index
      %c0_46 = arith.constant 0 : index
      %50 = vector.load %arg7[%c0_45, %c0_46] : memref<1x4xf32, #tpu.memory_space<vmem>>, vector<1x4xf32>
      %51 = vector.extract_strided_slice %40 {offsets = [0, 0], sizes = [2, 4], strides = [1, 1]} : vector<2x32xf32> to vector<2x4xf32>
      %52 = vector.extract_strided_slice %40 {offsets = [0, 4], sizes = [2, 4], strides = [1, 1]} : vector<2x32xf32> to vector<2x4xf32>
      %53 = vector.broadcast %49 : vector<1x4xf32> to vector<2x4xf32>
      %54 = arith.mulf %51, %53 : vector<2x4xf32>
      %55 = vector.broadcast %50 : vector<1x4xf32> to vector<2x4xf32>
      %56 = arith.mulf %52, %55 : vector<2x4xf32>
      %57 = arith.subf %54, %56 : vector<2x4xf32>
      %58 = arith.truncf %57 : vector<2x4xf32> to vector<2x4xbf16>
      %c0_47 = arith.constant 0 : index
      %c0_48 = arith.constant 0 : index
      %59 = vector.load %arg8[%c0_47, %c0_48] : memref<2x32xbf16, #tpu.memory_space<vmem>>, vector<2x4xbf16>
      tpu.vector_store %arg8[%c0_47, %c0_48], %58 {strides = array<i32>} : memref<2x32xbf16, #tpu.memory_space<vmem>>, vector<2x4xbf16>,
      %60 = vector.broadcast %50 : vector<1x4xf32> to vector<2x4xf32>
      %61 = arith.mulf %51, %60 : vector<2x4xf32>
      %62 = vector.broadcast %49 : vector<1x4xf32> to vector<2x4xf32>
      %63 = arith.mulf %52, %62 : vector<2x4xf32>
      %64 = arith.addf %61, %63 : vector<2x4xf32>
      %65 = arith.truncf %64 : vector<2x4xf32> to vector<2x4xbf16>
      %c0_49 = arith.constant 0 : index
      %c4 = arith.constant 4 : index
      %66 = vector.load %arg8[%c0_49, %c4] : memref<2x32xbf16, #tpu.memory_space<vmem>>, vector<2x4xbf16>
      tpu.vector_store %arg8[%c0_49, %c4], %65 {strides = array<i32>} : memref<2x32xbf16, #tpu.memory_space<vmem>>, vector<2x4xbf16>,
      %67 = vector.extract_strided_slice %40 {offsets = [0, 8], sizes = [2, 4], strides = [1, 1]} : vector<2x32xf32> to vector<2x4xf32>
      %68 = vector.extract_strided_slice %40 {offsets = [0, 12], sizes = [2, 4], strides = [1, 1]} : vector<2x32xf32> to vector<2x4xf32>
      %69 = vector.broadcast %49 : vector<1x4xf32> to vector<2x4xf32>
      %70 = arith.mulf %67, %69 : vector<2x4xf32>
      %71 = vector.broadcast %50 : vector<1x4xf32> to vector<2x4xf32>
      %72 = arith.mulf %68, %71 : vector<2x4xf32>
      %73 = arith.subf %70, %72 : vector<2x4xf32>
      %74 = arith.truncf %73 : vector<2x4xf32> to vector<2x4xbf16>
      %c0_50 = arith.constant 0 : index
      %c8 = arith.constant 8 : index
      %75 = vector.load %arg8[%c0_50, %c8] : memref<2x32xbf16, #tpu.memory_space<vmem>>, vector<2x4xbf16>
      tpu.vector_store %arg8[%c0_50, %c8], %74 {strides = array<i32>} : memref<2x32xbf16, #tpu.memory_space<vmem>>, vector<2x4xbf16>,
      %76 = vector.broadcast %50 : vector<1x4xf32> to vector<2x4xf32>
      %77 = arith.mulf %67, %76 : vector<2x4xf32>
      %78 = vector.broadcast %49 : vector<1x4xf32> to vector<2x4xf32>
      %79 = arith.mulf %68, %78 : vector<2x4xf32>
      %80 = arith.addf %77, %79 : vector<2x4xf32>
      %81 = arith.truncf %80 : vector<2x4xf32> to vector<2x4xbf16>
      %c0_51 = arith.constant 0 : index
      %c12 = arith.constant 12 : index
      %82 = vector.load %arg8[%c0_51, %c12] : memref<2x32xbf16, #tpu.memory_space<vmem>>, vector<2x4xbf16>
      tpu.vector_store %arg8[%c0_51, %c12], %81 {strides = array<i32>} : memref<2x32xbf16, #tpu.memory_space<vmem>>, vector<2x4xbf16>,
      %83 = vector.extract_strided_slice %40 {offsets = [0, 16], sizes = [2, 4], strides = [1, 1]} : vector<2x32xf32> to vector<2x4xf32>
      %84 = vector.extract_strided_slice %40 {offsets = [0, 20], sizes = [2, 4], strides = [1, 1]} : vector<2x32xf32> to vector<2x4xf32>
      %85 = vector.broadcast %49 : vector<1x4xf32> to vector<2x4xf32>
      %86 = arith.mulf %83, %85 : vector<2x4xf32>
      %87 = vector.broadcast %50 : vector<1x4xf32> to vector<2x4xf32>
      %88 = arith.mulf %84, %87 : vector<2x4xf32>
      %89 = arith.subf %86, %88 : vector<2x4xf32>
      %90 = arith.truncf %89 : vector<2x4xf32> to vector<2x4xbf16>
      %c0_52 = arith.constant 0 : index
      %c16 = arith.constant 16 : index
      %91 = vector.load %arg8[%c0_52, %c16] : memref<2x32xbf16, #tpu.memory_space<vmem>>, vector<2x4xbf16>
      tpu.vector_store %arg8[%c0_52, %c16], %90 {strides = array<i32>} : memref<2x32xbf16, #tpu.memory_space<vmem>>, vector<2x4xbf16>,
      %92 = vector.broadcast %50 : vector<1x4xf32> to vector<2x4xf32>
      %93 = arith.mulf %83, %92 : vector<2x4xf32>
      %94 = vector.broadcast %49 : vector<1x4xf32> to vector<2x4xf32>
      %95 = arith.mulf %84, %94 : vector<2x4xf32>
      %96 = arith.addf %93, %95 : vector<2x4xf32>
      %97 = arith.truncf %96 : vector<2x4xf32> to vector<2x4xbf16>
      %c0_53 = arith.constant 0 : index
      %c20 = arith.constant 20 : index
      %98 = vector.load %arg8[%c0_53, %c20] : memref<2x32xbf16, #tpu.memory_space<vmem>>, vector<2x4xbf16>
      tpu.vector_store %arg8[%c0_53, %c20], %97 {strides = array<i32>} : memref<2x32xbf16, #tpu.memory_space<vmem>>, vector<2x4xbf16>,
      %99 = vector.extract_strided_slice %40 {offsets = [0, 24], sizes = [2, 4], strides = [1, 1]} : vector<2x32xf32> to vector<2x4xf32>
      %100 = vector.extract_strided_slice %40 {offsets = [0, 28], sizes = [2, 4], strides = [1, 1]} : vector<2x32xf32> to vector<2x4xf32>
      %101 = vector.broadcast %49 : vector<1x4xf32> to vector<2x4xf32>
      %102 = arith.mulf %99, %101 : vector<2x4xf32>
      %103 = vector.broadcast %50 : vector<1x4xf32> to vector<2x4xf32>
      %104 = arith.mulf %100, %103 : vector<2x4xf32>
      %105 = arith.subf %102, %104 : vector<2x4xf32>
      %106 = arith.truncf %105 : vector<2x4xf32> to vector<2x4xbf16>
      %c0_54 = arith.constant 0 : index
      %c24 = arith.constant 24 : index
      %107 = vector.load %arg8[%c0_54, %c24] : memref<2x32xbf16, #tpu.memory_space<vmem>>, vector<2x4xbf16>
      tpu.vector_store %arg8[%c0_54, %c24], %106 {strides = array<i32>} : memref<2x32xbf16, #tpu.memory_space<vmem>>, vector<2x4xbf16>,
      %108 = vector.broadcast %50 : vector<1x4xf32> to vector<2x4xf32>
      %109 = arith.mulf %99, %108 : vector<2x4xf32>
      %110 = vector.broadcast %49 : vector<1x4xf32> to vector<2x4xf32>
      %111 = arith.mulf %100, %110 : vector<2x4xf32>
      %112 = arith.addf %109, %111 : vector<2x4xf32>
      %113 = arith.truncf %112 : vector<2x4xf32> to vector<2x4xbf16>
      %c0_55 = arith.constant 0 : index
      %c28 = arith.constant 28 : index
      %114 = vector.load %arg8[%c0_55, %c28] : memref<2x32xbf16, #tpu.memory_space<vmem>>, vector<2x4xbf16>
      tpu.vector_store %arg8[%c0_55, %c28], %113 {strides = array<i32>} : memref<2x32xbf16, #tpu.memory_space<vmem>>, vector<2x4xbf16>,
      %115 = vector.extract_strided_slice %43 {offsets = [0, 0], sizes = [2, 4], strides = [1, 1]} : vector<2x16xf32> to vector<2x4xf32>
      %116 = vector.extract_strided_slice %43 {offsets = [0, 4], sizes = [2, 4], strides = [1, 1]} : vector<2x16xf32> to vector<2x4xf32>
      %117 = vector.broadcast %49 : vector<1x4xf32> to vector<2x4xf32>
      %118 = arith.mulf %115, %117 : vector<2x4xf32>
      %119 = vector.broadcast %50 : vector<1x4xf32> to vector<2x4xf32>
      %120 = arith.mulf %116, %119 : vector<2x4xf32>
      %121 = arith.subf %118, %120 : vector<2x4xf32>
      %122 = arith.truncf %121 : vector<2x4xf32> to vector<2x4xbf16>
      %c0_56 = arith.constant 0 : index
      %c0_57 = arith.constant 0 : index
      %123 = vector.load %arg9[%c0_56, %c0_57] : memref<2x16xbf16, #tpu.memory_space<vmem>>, vector<2x4xbf16>
      tpu.vector_store %arg9[%c0_56, %c0_57], %122 {strides = array<i32>} : memref<2x16xbf16, #tpu.memory_space<vmem>>, vector<2x4xbf16>,
      %124 = vector.broadcast %50 : vector<1x4xf32> to vector<2x4xf32>
      %125 = arith.mulf %115, %124 : vector<2x4xf32>
      %126 = vector.broadcast %49 : vector<1x4xf32> to vector<2x4xf32>
      %127 = arith.mulf %116, %126 : vector<2x4xf32>
      %128 = arith.addf %125, %127 : vector<2x4xf32>
      %129 = arith.truncf %128 : vector<2x4xf32> to vector<2x4xbf16>
      %c0_58 = arith.constant 0 : index
      %c4_59 = arith.constant 4 : index
      %130 = vector.load %arg9[%c0_58, %c4_59] : memref<2x16xbf16, #tpu.memory_space<vmem>>, vector<2x4xbf16>
      tpu.vector_store %arg9[%c0_58, %c4_59], %129 {strides = array<i32>} : memref<2x16xbf16, #tpu.memory_space<vmem>>, vector<2x4xbf16>,
      %131 = vector.extract_strided_slice %43 {offsets = [0, 8], sizes = [2, 4], strides = [1, 1]} : vector<2x16xf32> to vector<2x4xf32>
      %132 = vector.extract_strided_slice %43 {offsets = [0, 12], sizes = [2, 4], strides = [1, 1]} : vector<2x16xf32> to vector<2x4xf32>
      %133 = vector.broadcast %49 : vector<1x4xf32> to vector<2x4xf32>
      %134 = arith.mulf %131, %133 : vector<2x4xf32>
      %135 = vector.broadcast %50 : vector<1x4xf32> to vector<2x4xf32>
      %136 = arith.mulf %132, %135 : vector<2x4xf32>
      %137 = arith.subf %134, %136 : vector<2x4xf32>
      %138 = arith.truncf %137 : vector<2x4xf32> to vector<2x4xbf16>
      %c0_60 = arith.constant 0 : index
      %c8_61 = arith.constant 8 : index
      %139 = vector.load %arg9[%c0_60, %c8_61] : memref<2x16xbf16, #tpu.memory_space<vmem>>, vector<2x4xbf16>
      tpu.vector_store %arg9[%c0_60, %c8_61], %138 {strides = array<i32>} : memref<2x16xbf16, #tpu.memory_space<vmem>>, vector<2x4xbf16>,
      %140 = vector.broadcast %50 : vector<1x4xf32> to vector<2x4xf32>
      %141 = arith.mulf %131, %140 : vector<2x4xf32>
      %142 = vector.broadcast %49 : vector<1x4xf32> to vector<2x4xf32>
      %143 = arith.mulf %132, %142 : vector<2x4xf32>
      %144 = arith.addf %141, %143 : vector<2x4xf32>
      %145 = arith.truncf %144 : vector<2x4xf32> to vector<2x4xbf16>
      %c0_62 = arith.constant 0 : index
      %c12_63 = arith.constant 12 : index
      %146 = vector.load %arg9[%c0_62, %c12_63] : memref<2x16xbf16, #tpu.memory_space<vmem>>, vector<2x4xbf16>
      tpu.vector_store %arg9[%c0_62, %c12_63], %145 {strides = array<i32>} : memref<2x16xbf16, #tpu.memory_space<vmem>>, vector<2x4xbf16>,
    } else {
    }
    return
  }
  func.func @transform_0(%arg0: i32) -> (i32, i32) {
    %c0_i32 = arith.constant 0 : i32
    %c0_i32_0 = arith.constant 0 : i32
    return %c0_i32, %arg0 : i32, i32
  }
  func.func @transform_1(%arg0: i32) -> (i32, i32) {
    %c0_i32 = arith.constant 0 : i32
    %c0_i32_0 = arith.constant 0 : i32
    return %c0_i32, %arg0 : i32, i32
  }
  func.func @transform_2(%arg0: i32) -> (i32, i32) {
    %c0_i32 = arith.constant 0 : i32
    %c0_i32_0 = arith.constant 0 : i32
    return %c0_i32, %arg0 : i32, i32
  }
  func.func @transform_3(%arg0: i32) -> (i32, i32) {
    %c0_i32 = arith.constant 0 : i32
    %c0_i32_0 = arith.constant 0 : i32
    return %c0_i32, %arg0 : i32, i32
  }
  func.func @transform_4(%arg0: i32) -> (i32, i32) {
    %c0_i32 = arith.constant 0 : i32
    %c0_i32_0 = arith.constant 0 : i32
    return %c0_i32, %arg0 : i32, i32
  }
  func.func @transform_5(%arg0: i32) -> (i32, i32) {
    %c0_i32 = arith.constant 0 : i32
    %c0_i32_0 = arith.constant 0 : i32
    %c0_i32_1 = arith.constant 0 : i32
    return %c0_i32, %c0_i32_0 : i32, i32
  }
  func.func @transform_6(%arg0: i32) -> (i32, i32) {
    %c0_i32 = arith.constant 0 : i32
    %c0_i32_0 = arith.constant 0 : i32
    %c0_i32_1 = arith.constant 0 : i32
    return %c0_i32, %c0_i32_0 : i32, i32
  }
  func.func @transform_7(%arg0: i32) -> (i32, i32) {
    %c0_i32 = arith.constant 0 : i32
    %c0_i32_0 = arith.constant 0 : i32
    %c0_i32_1 = arith.constant 0 : i32
    return %c0_i32, %c0_i32_0 : i32, i32
  }
  func.func @transform_8(%arg0: i32) -> (i32, i32) {
    %c0_i32 = arith.constant 0 : i32
    %c0_i32_0 = arith.constant 0 : i32
    %c0_i32_1 = arith.constant 0 : i32
    return %c0_i32, %c0_i32_0 : i32, i32
  }
  func.func @transform_9(%arg0: i32) -> (i32, i32) {
    %c0_i32 = arith.constant 0 : i32
    %c0_i32_0 = arith.constant 0 : i32
    %c0_i32_1 = arith.constant 0 : i32
    return %c0_i32, %c0_i32_0 : i32, i32
  }
}

module attributes {stable_mosaic.version = 11 : i64} {
  func.func @_attention_kernel(%arg0: i32, %arg1: memref<1x4x8xbf16, #tpu.memory_space<vmem>>, %arg2: memref<1x2x4x8xbf16, #tpu.memory_space<vmem>>, %arg3: memref<1x2x4x8xbf16, #tpu.memory_space<vmem>>, %arg4: memref<1x4x8xbf16, #tpu.memory_space<vmem>>) attributes {dimension_semantics = [#tpu.dimension_semantics<parallel>], iteration_bounds = array<i64: 2>, scalar_prefetch = 0 : i64, scratch_operands = 0 : i64, tpu.core_type = #tpu.core_type<tc>, window_params = [{transform_indices = @transform_0, window_bounds = array<i64: 1, 4, 8>}, {transform_indices = @transform_1, window_bounds = array<i64: 1, 2, 4, 8>}, {transform_indices = @transform_2, window_bounds = array<i64: 1, 2, 4, 8>}, {transform_indices = @transform_3, window_bounds = array<i64: 1, 4, 8>}]} {
    %c0 = arith.constant 0 : index
    %c0_0 = arith.constant 0 : index
    %c0_1 = arith.constant 0 : index
    %0 = vector.load %arg1[%c0, %c0_0, %c0_1] : memref<1x4x8xbf16, #tpu.memory_space<vmem>>, vector<1x2x8xbf16>
    %1 = vector.shape_cast %0 : vector<1x2x8xbf16> to vector<2x8xbf16>
    %c0_2 = arith.constant 0 : index
    %c0_3 = arith.constant 0 : index
    %c0_4 = arith.constant 0 : index
    %c0_5 = arith.constant 0 : index
    %2 = vector.load %arg2[%c0_2, %c0_3, %c0_4, %c0_5] : memref<1x2x4x8xbf16, #tpu.memory_space<vmem>>, vector<1x1x4x8xbf16>
    %3 = vector.shape_cast %2 : vector<1x1x4x8xbf16> to vector<4x8xbf16>
    %c0_6 = arith.constant 0 : index
    %c0_7 = arith.constant 0 : index
    %c0_8 = arith.constant 0 : index
    %c0_9 = arith.constant 0 : index
    %4 = vector.load %arg3[%c0_6, %c0_7, %c0_8, %c0_9] : memref<1x2x4x8xbf16, #tpu.memory_space<vmem>>, vector<1x1x4x8xbf16>
    %5 = vector.shape_cast %4 : vector<1x1x4x8xbf16> to vector<4x8xbf16>
    %cst = arith.constant dense<0.000000e+00> : vector<2x4xf32>
    %6 = tpu.matmul %1, %3, %cst {dimension_numbers = #tpu.dot_dimension_numbers<[1], [1], [0], [0], [0, 0, 1, 0], [], []>} : vector<2x8xbf16>, vector<4x8xbf16>, vector<2x4xf32> -> vector<2x4xf32>
    %cst_10 = arith.constant 0.353553385 : f32
    %7 = vector.broadcast %cst_10 : f32 to vector<2x4xf32>
    %8 = arith.mulf %6, %7 : vector<2x4xf32>
    %cst_11 = arith.constant dense<0xFF800000> : vector<2xf32>
    %9 = vector.multi_reduction <maximumf>, %8, %cst_11 [1] : vector<2x4xf32> to vector<2xf32>
    %10 = vector.shape_cast %9 : vector<2xf32> to vector<2x1xf32>
    %11 = vector.broadcast %10 : vector<2x1xf32> to vector<2x4xf32>
    %12 = arith.subf %8, %11 : vector<2x4xf32>
    %13 = math.exp %12 : vector<2x4xf32>
    %cst_12 = arith.constant dense<0.000000e+00> : vector<2xf32>
    %14 = vector.multi_reduction <add>, %13, %cst_12 [1] : vector<2x4xf32> to vector<2xf32>
    %15 = vector.shape_cast %14 : vector<2xf32> to vector<2x1xf32>
    %16 = tpu.reciprocal %15 {approx = true} : vector<2x1xf32> -> vector<2x1xf32>
    %17 = vector.broadcast %16 : vector<2x1xf32> to vector<2x4xf32>
    %18 = arith.mulf %13, %17 : vector<2x4xf32>
    %19 = arith.truncf %18 : vector<2x4xf32> to vector<2x4xbf16>
    %cst_13 = arith.constant dense<0.000000e+00> : vector<2x8xf32>
    %20 = tpu.matmul %19, %5, %cst_13 {dimension_numbers = #tpu.dot_dimension_numbers<[1], [0], [0], [1], [0, 0, 1, 1], [], []>} : vector<2x4xbf16>, vector<4x8xbf16>, vector<2x8xf32> -> vector<2x8xf32>
    %21 = arith.truncf %20 : vector<2x8xf32> to vector<2x8xbf16>
    %c0_14 = arith.constant 0 : index
    %c0_15 = arith.constant 0 : index
    %c0_16 = arith.constant 0 : index
    %22 = vector.load %arg4[%c0_14, %c0_15, %c0_16] : memref<1x4x8xbf16, #tpu.memory_space<vmem>>, vector<1x2x8xbf16>
    %23 = vector.shape_cast %22 : vector<1x2x8xbf16> to vector<2x8xbf16>
    %24 = vector.shape_cast %21 : vector<2x8xbf16> to vector<1x2x8xbf16>
    tpu.vector_store %arg4[%c0_14, %c0_15, %c0_16], %24 {strides = array<i32>} : memref<1x4x8xbf16, #tpu.memory_space<vmem>>, vector<1x2x8xbf16>,
    %c0_17 = arith.constant 0 : index
    %c2 = arith.constant 2 : index
    %c0_18 = arith.constant 0 : index
    %25 = vector.load %arg1[%c0_17, %c2, %c0_18] : memref<1x4x8xbf16, #tpu.memory_space<vmem>>, vector<1x2x8xbf16>
    %26 = vector.shape_cast %25 : vector<1x2x8xbf16> to vector<2x8xbf16>
    %c0_19 = arith.constant 0 : index
    %c1 = arith.constant 1 : index
    %c0_20 = arith.constant 0 : index
    %c0_21 = arith.constant 0 : index
    %27 = vector.load %arg2[%c0_19, %c1, %c0_20, %c0_21] : memref<1x2x4x8xbf16, #tpu.memory_space<vmem>>, vector<1x1x4x8xbf16>
    %28 = vector.shape_cast %27 : vector<1x1x4x8xbf16> to vector<4x8xbf16>
    %c0_22 = arith.constant 0 : index
    %c1_23 = arith.constant 1 : index
    %c0_24 = arith.constant 0 : index
    %c0_25 = arith.constant 0 : index
    %29 = vector.load %arg3[%c0_22, %c1_23, %c0_24, %c0_25] : memref<1x2x4x8xbf16, #tpu.memory_space<vmem>>, vector<1x1x4x8xbf16>
    %30 = vector.shape_cast %29 : vector<1x1x4x8xbf16> to vector<4x8xbf16>
    %cst_26 = arith.constant dense<0.000000e+00> : vector<2x4xf32>
    %31 = tpu.matmul %26, %28, %cst_26 {dimension_numbers = #tpu.dot_dimension_numbers<[1], [1], [0], [0], [0, 0, 1, 0], [], []>} : vector<2x8xbf16>, vector<4x8xbf16>, vector<2x4xf32> -> vector<2x4xf32>
    %cst_27 = arith.constant 0.353553385 : f32
    %32 = vector.broadcast %cst_27 : f32 to vector<2x4xf32>
    %33 = arith.mulf %31, %32 : vector<2x4xf32>
    %cst_28 = arith.constant dense<0xFF800000> : vector<2xf32>
    %34 = vector.multi_reduction <maximumf>, %33, %cst_28 [1] : vector<2x4xf32> to vector<2xf32>
    %35 = vector.shape_cast %34 : vector<2xf32> to vector<2x1xf32>
    %36 = vector.broadcast %35 : vector<2x1xf32> to vector<2x4xf32>
    %37 = arith.subf %33, %36 : vector<2x4xf32>
    %38 = math.exp %37 : vector<2x4xf32>
    %cst_29 = arith.constant dense<0.000000e+00> : vector<2xf32>
    %39 = vector.multi_reduction <add>, %38, %cst_29 [1] : vector<2x4xf32> to vector<2xf32>
    %40 = vector.shape_cast %39 : vector<2xf32> to vector<2x1xf32>
    %41 = tpu.reciprocal %40 {approx = true} : vector<2x1xf32> -> vector<2x1xf32>
    %42 = vector.broadcast %41 : vector<2x1xf32> to vector<2x4xf32>
    %43 = arith.mulf %38, %42 : vector<2x4xf32>
    %44 = arith.truncf %43 : vector<2x4xf32> to vector<2x4xbf16>
    %cst_30 = arith.constant dense<0.000000e+00> : vector<2x8xf32>
    %45 = tpu.matmul %44, %30, %cst_30 {dimension_numbers = #tpu.dot_dimension_numbers<[1], [0], [0], [1], [0, 0, 1, 1], [], []>} : vector<2x4xbf16>, vector<4x8xbf16>, vector<2x8xf32> -> vector<2x8xf32>
    %46 = arith.truncf %45 : vector<2x8xf32> to vector<2x8xbf16>
    %c0_31 = arith.constant 0 : index
    %c2_32 = arith.constant 2 : index
    %c0_33 = arith.constant 0 : index
    %47 = vector.load %arg4[%c0_31, %c2_32, %c0_33] : memref<1x4x8xbf16, #tpu.memory_space<vmem>>, vector<1x2x8xbf16>
    %48 = vector.shape_cast %47 : vector<1x2x8xbf16> to vector<2x8xbf16>
    %49 = vector.shape_cast %46 : vector<2x8xbf16> to vector<1x2x8xbf16>
    tpu.vector_store %arg4[%c0_31, %c2_32, %c0_33], %49 {strides = array<i32>} : memref<1x4x8xbf16, #tpu.memory_space<vmem>>, vector<1x2x8xbf16>,
    return
  }
  func.func @transform_0(%arg0: i32) -> (i32, i32, i32) {
    %c0_i32 = arith.constant 0 : i32
    %c0_i32_0 = arith.constant 0 : i32
    %c0_i32_1 = arith.constant 0 : i32
    return %arg0, %c0_i32, %c0_i32_0 : i32, i32, i32
  }
  func.func @transform_1(%arg0: i32) -> (i32, i32, i32, i32) {
    %c0_i32 = arith.constant 0 : i32
    %c0_i32_0 = arith.constant 0 : i32
    %c0_i32_1 = arith.constant 0 : i32
    %c0_i32_2 = arith.constant 0 : i32
    return %arg0, %c0_i32, %c0_i32_0, %c0_i32_1 : i32, i32, i32, i32
  }
  func.func @transform_2(%arg0: i32) -> (i32, i32, i32, i32) {
    %c0_i32 = arith.constant 0 : i32
    %c0_i32_0 = arith.constant 0 : i32
    %c0_i32_1 = arith.constant 0 : i32
    %c0_i32_2 = arith.constant 0 : i32
    return %arg0, %c0_i32, %c0_i32_0, %c0_i32_1 : i32, i32, i32, i32
  }
  func.func @transform_3(%arg0: i32) -> (i32, i32, i32) {
    %c0_i32 = arith.constant 0 : i32
    %c0_i32_0 = arith.constant 0 : i32
    %c0_i32_1 = arith.constant 0 : i32
    return %arg0, %c0_i32, %c0_i32_0 : i32, i32, i32
  }
}

module attributes {stable_mosaic.version = 11 : i64} {
  func.func @_linear_residual_kernel(%arg0: i32, %arg1: i32, %arg2: memref<2x32xbf16, #tpu.memory_space<vmem>>, %arg3: memref<32x32xbf16, #tpu.memory_space<vmem>>, %arg4: memref<2x32xf32, #tpu.memory_space<vmem>>, %arg5: memref<2x32xf32, #tpu.memory_space<vmem>>, %arg6: memref<2x32xf32, #tpu.memory_space<vmem>>) attributes {dimension_semantics = [#tpu.dimension_semantics<parallel>, #tpu.dimension_semantics<arbitrary>], iteration_bounds = array<i64: 1, 1>, scalar_prefetch = 0 : i64, scratch_operands = 1 : i64, tpu.core_type = #tpu.core_type<tc>, window_params = [{transform_indices = @transform_0, window_bounds = array<i64: 2, 32>}, {transform_indices = @transform_1, window_bounds = array<i64: 32, 32>}, {transform_indices = @transform_2, window_bounds = array<i64: 2, 32>}, {transform_indices = @transform_3, window_bounds = array<i64: 2, 32>}]} {
    %c0_i32 = arith.constant 0 : i32
    %0 = arith.cmpi eq, %arg1, %c0_i32 : i32
    %1 = arith.extui %0 : i1 to i32
    %c0_i32_0 = arith.constant 0 : i32
    %2 = arith.cmpi ne, %1, %c0_i32_0 : i32
    scf.if %2 {
      %cst_10 = arith.constant 0.000000e+00 : f32
      %12 = vector.broadcast %cst_10 : f32 to vector<2x32xf32>
      %c0_11 = arith.constant 0 : index
      %c0_12 = arith.constant 0 : index
      %13 = vector.load %arg6[%c0_11, %c0_12] : memref<2x32xf32, #tpu.memory_space<vmem>>, vector<2x32xf32>
      tpu.vector_store %arg6[%c0_11, %c0_12], %12 {strides = array<i32>} : memref<2x32xf32, #tpu.memory_space<vmem>>, vector<2x32xf32>,
    } else {
    }
    %c0 = arith.constant 0 : index
    %c0_1 = arith.constant 0 : index
    %3 = vector.load %arg6[%c0, %c0_1] : memref<2x32xf32, #tpu.memory_space<vmem>>, vector<2x32xf32>
    %c0_2 = arith.constant 0 : index
    %c0_3 = arith.constant 0 : index
    %4 = vector.load %arg2[%c0_2, %c0_3] : memref<2x32xbf16, #tpu.memory_space<vmem>>, vector<2x32xbf16>
    %c0_4 = arith.constant 0 : index
    %c0_5 = arith.constant 0 : index
    %5 = vector.load %arg3[%c0_4, %c0_5] : memref<32x32xbf16, #tpu.memory_space<vmem>>, vector<32x32xbf16>
    %cst = arith.constant dense<0.000000e+00> : vector<2x32xf32>
    %6 = tpu.matmul %4, %5, %cst {dimension_numbers = #tpu.dot_dimension_numbers<[1], [1], [0], [0], [0, 0, 1, 0], [], []>} : vector<2x32xbf16>, vector<32x32xbf16>, vector<2x32xf32> -> vector<2x32xf32>
    %7 = arith.addf %3, %6 : vector<2x32xf32>
    %c0_6 = arith.constant 0 : index
    %c0_7 = arith.constant 0 : index
    %8 = vector.load %arg6[%c0_6, %c0_7] : memref<2x32xf32, #tpu.memory_space<vmem>>, vector<2x32xf32>
    tpu.vector_store %arg6[%c0_6, %c0_7], %7 {strides = array<i32>} : memref<2x32xf32, #tpu.memory_space<vmem>>, vector<2x32xf32>,
    %c0_i32_8 = arith.constant 0 : i32
    %9 = arith.cmpi eq, %arg1, %c0_i32_8 : i32
    %10 = arith.extui %9 : i1 to i32
    %c0_i32_9 = arith.constant 0 : i32
    %11 = arith.cmpi ne, %10, %c0_i32_9 : i32
    scf.if %11 {
      %c0_10 = arith.constant 0 : index
      %c0_11 = arith.constant 0 : index
      %12 = vector.load %arg6[%c0_10, %c0_11] : memref<2x32xf32, #tpu.memory_space<vmem>>, vector<2x32xf32>
      %c0_12 = arith.constant 0 : index
      %c0_13 = arith.constant 0 : index
      %13 = vector.load %arg4[%c0_12, %c0_13] : memref<2x32xf32, #tpu.memory_space<vmem>>, vector<2x32xf32>
      %14 = arith.addf %12, %13 : vector<2x32xf32>
      %c0_14 = arith.constant 0 : index
      %c0_15 = arith.constant 0 : index
      %15 = vector.load %arg5[%c0_14, %c0_15] : memref<2x32xf32, #tpu.memory_space<vmem>>, vector<2x32xf32>
      tpu.vector_store %arg5[%c0_14, %c0_15], %14 {strides = array<i32>} : memref<2x32xf32, #tpu.memory_space<vmem>>, vector<2x32xf32>,
    } else {
    }
    return
  }
  func.func @transform_0(%arg0: i32, %arg1: i32) -> (i32, i32) {
    %c0_i32 = arith.constant 0 : i32
    %c0_i32_0 = arith.constant 0 : i32
    return %c0_i32, %arg1 : i32, i32
  }
  func.func @transform_1(%arg0: i32, %arg1: i32) -> (i32, i32) {
    %c0_i32 = arith.constant 0 : i32
    return %arg0, %arg1 : i32, i32
  }
  func.func @transform_2(%arg0: i32, %arg1: i32) -> (i32, i32) {
    %c0_i32 = arith.constant 0 : i32
    %c0_i32_0 = arith.constant 0 : i32
    return %c0_i32, %arg0 : i32, i32
  }
  func.func @transform_3(%arg0: i32, %arg1: i32) -> (i32, i32) {
    %c0_i32 = arith.constant 0 : i32
    %c0_i32_0 = arith.constant 0 : i32
    return %c0_i32, %arg0 : i32, i32
  }
}

module attributes {stable_mosaic.version = 11 : i64} {
  func.func @_ffn_kernel(%arg0: i32, %arg1: memref<2x32xf32, #tpu.memory_space<vmem>>, %arg2: memref<1x32xf32, #tpu.memory_space<vmem>>, %arg3: memref<96x32xbf16, #tpu.memory_space<vmem>>, %arg4: memref<96x32xbf16, #tpu.memory_space<vmem>>, %arg5: memref<32x96xbf16, #tpu.memory_space<vmem>>, %arg6: memref<2x32xf32, #tpu.memory_space<vmem>>, %arg7: memref<2x32xf32, #tpu.memory_space<vmem>>, %arg8: memref<2x32xbf16, #tpu.memory_space<vmem>>) attributes {dimension_semantics = [#tpu.dimension_semantics<arbitrary>], iteration_bounds = array<i64: 1>, scalar_prefetch = 0 : i64, scratch_operands = 2 : i64, tpu.core_type = #tpu.core_type<tc>, window_params = [{pipeline_mode = #tpu.pipeline_mode<synchronous>, transform_indices = @transform_0, window_bounds = array<i64: 2, 32>}, {pipeline_mode = #tpu.pipeline_mode<synchronous>, transform_indices = @transform_1, window_bounds = array<i64: 1, 32>}, {transform_indices = @transform_2, window_bounds = array<i64: 96, 32>}, {transform_indices = @transform_3, window_bounds = array<i64: 96, 32>}, {transform_indices = @transform_4, window_bounds = array<i64: 32, 96>}, {pipeline_mode = #tpu.pipeline_mode<synchronous>, transform_indices = @transform_5, window_bounds = array<i64: 2, 32>}]} {
    %c0_i32 = arith.constant 0 : i32
    %0 = arith.cmpi eq, %arg0, %c0_i32 : i32
    %1 = arith.extui %0 : i1 to i32
    %c0_i32_0 = arith.constant 0 : i32
    %2 = arith.cmpi ne, %1, %c0_i32_0 : i32
    scf.if %2 {
      %c0_19 = arith.constant 0 : index
      %c0_20 = arith.constant 0 : index
      %26 = vector.load %arg1[%c0_19, %c0_20] : memref<2x32xf32, #tpu.memory_space<vmem>>, vector<2x32xf32>
      %27 = arith.mulf %26, %26 : vector<2x32xf32>
      %cst_21 = arith.constant dense<0.000000e+00> : vector<2xf32>
      %28 = vector.multi_reduction <add>, %27, %cst_21 [1] : vector<2x32xf32> to vector<2xf32>
      %29 = vector.shape_cast %28 : vector<2xf32> to vector<2x1xf32>
      %cst_22 = arith.constant 3.200000e+01 : f32
      %30 = vector.broadcast %cst_22 : f32 to vector<2x1xf32>
      %31 = arith.divf %29, %30 : vector<2x1xf32>
      %cst_23 = arith.constant 9.99999974E-6 : f32
      %32 = vector.broadcast %cst_23 : f32 to vector<2x1xf32>
      %33 = arith.addf %31, %32 : vector<2x1xf32>
      %34 = math.rsqrt %33 : vector<2x1xf32>
      %35 = vector.broadcast %34 : vector<2x1xf32> to vector<2x32xf32>
      %36 = arith.mulf %26, %35 : vector<2x32xf32>
      %c0_24 = arith.constant 0 : index
      %c0_25 = arith.constant 0 : index
      %37 = vector.load %arg2[%c0_24, %c0_25] : memref<1x32xf32, #tpu.memory_space<vmem>>, vector<1x32xf32>
      %38 = vector.broadcast %37 : vector<1x32xf32> to vector<2x32xf32>
      %39 = arith.mulf %36, %38 : vector<2x32xf32>
      %40 = arith.truncf %39 : vector<2x32xf32> to vector<2x32xbf16>
      %c0_26 = arith.constant 0 : index
      %c0_27 = arith.constant 0 : index
      %41 = vector.load %arg8[%c0_26, %c0_27] : memref<2x32xbf16, #tpu.memory_space<vmem>>, vector<2x32xbf16>
      tpu.vector_store %arg8[%c0_26, %c0_27], %40 {strides = array<i32>} : memref<2x32xbf16, #tpu.memory_space<vmem>>, vector<2x32xbf16>,
      %cst_28 = arith.constant 0.000000e+00 : f32
      %42 = vector.broadcast %cst_28 : f32 to vector<2x32xf32>
      %c0_29 = arith.constant 0 : index
      %c0_30 = arith.constant 0 : index
      %43 = vector.load %arg7[%c0_29, %c0_30] : memref<2x32xf32, #tpu.memory_space<vmem>>, vector<2x32xf32>
      tpu.vector_store %arg7[%c0_29, %c0_30], %42 {strides = array<i32>} : memref<2x32xf32, #tpu.memory_space<vmem>>, vector<2x32xf32>,
    } else {
    }
    %c0 = arith.constant 0 : index
    %c0_1 = arith.constant 0 : index
    %3 = vector.load %arg8[%c0, %c0_1] : memref<2x32xbf16, #tpu.memory_space<vmem>>, vector<2x32xbf16>
    %c0_2 = arith.constant 0 : index
    %c0_3 = arith.constant 0 : index
    %4 = vector.load %arg3[%c0_2, %c0_3] : memref<96x32xbf16, #tpu.memory_space<vmem>>, vector<96x32xbf16>
    %cst = arith.constant dense<0.000000e+00> : vector<2x96xf32>
    %5 = tpu.matmul %3, %4, %cst {dimension_numbers = #tpu.dot_dimension_numbers<[1], [1], [0], [0], [0, 0, 1, 0], [], []>} : vector<2x32xbf16>, vector<96x32xbf16>, vector<2x96xf32> -> vector<2x96xf32>
    %c0_4 = arith.constant 0 : index
    %c0_5 = arith.constant 0 : index
    %6 = vector.load %arg4[%c0_4, %c0_5] : memref<96x32xbf16, #tpu.memory_space<vmem>>, vector<96x32xbf16>
    %cst_6 = arith.constant dense<0.000000e+00> : vector<2x96xf32>
    %7 = tpu.matmul %3, %6, %cst_6 {dimension_numbers = #tpu.dot_dimension_numbers<[1], [1], [0], [0], [0, 0, 1, 0], [], []>} : vector<2x32xbf16>, vector<96x32xbf16>, vector<2x96xf32> -> vector<2x96xf32>
    %cst_7 = arith.constant 0.000000e+00 : f32
    %8 = vector.broadcast %cst_7 : f32 to vector<2x96xf32>
    %9 = arith.subf %8, %5 : vector<2x96xf32>
    %10 = math.exp %9 : vector<2x96xf32>
    %cst_8 = arith.constant 1.000000e+00 : f32
    %11 = vector.broadcast %cst_8 : f32 to vector<2x96xf32>
    %12 = arith.addf %11, %10 : vector<2x96xf32>
    %cst_9 = arith.constant 1.000000e+00 : f32
    %13 = vector.broadcast %cst_9 : f32 to vector<2x96xf32>
    %14 = arith.divf %13, %12 : vector<2x96xf32>
    %15 = arith.mulf %5, %14 : vector<2x96xf32>
    %16 = arith.mulf %15, %7 : vector<2x96xf32>
    %c0_10 = arith.constant 0 : index
    %c0_11 = arith.constant 0 : index
    %17 = vector.load %arg7[%c0_10, %c0_11] : memref<2x32xf32, #tpu.memory_space<vmem>>, vector<2x32xf32>
    %18 = arith.truncf %16 : vector<2x96xf32> to vector<2x96xbf16>
    %c0_12 = arith.constant 0 : index
    %c0_13 = arith.constant 0 : index
    %19 = vector.load %arg5[%c0_12, %c0_13] : memref<32x96xbf16, #tpu.memory_space<vmem>>, vector<32x96xbf16>
    %cst_14 = arith.constant dense<0.000000e+00> : vector<2x32xf32>
    %20 = tpu.matmul %18, %19, %cst_14 {dimension_numbers = #tpu.dot_dimension_numbers<[1], [1], [0], [0], [0, 0, 1, 0], [], []>} : vector<2x96xbf16>, vector<32x96xbf16>, vector<2x32xf32> -> vector<2x32xf32>
    %21 = arith.addf %17, %20 : vector<2x32xf32>
    %c0_15 = arith.constant 0 : index
    %c0_16 = arith.constant 0 : index
    %22 = vector.load %arg7[%c0_15, %c0_16] : memref<2x32xf32, #tpu.memory_space<vmem>>, vector<2x32xf32>
    tpu.vector_store %arg7[%c0_15, %c0_16], %21 {strides = array<i32>} : memref<2x32xf32, #tpu.memory_space<vmem>>, vector<2x32xf32>,
    %c0_i32_17 = arith.constant 0 : i32
    %23 = arith.cmpi eq, %arg0, %c0_i32_17 : i32
    %24 = arith.extui %23 : i1 to i32
    %c0_i32_18 = arith.constant 0 : i32
    %25 = arith.cmpi ne, %24, %c0_i32_18 : i32
    scf.if %25 {
      %c0_19 = arith.constant 0 : index
      %c0_20 = arith.constant 0 : index
      %26 = vector.load %arg7[%c0_19, %c0_20] : memref<2x32xf32, #tpu.memory_space<vmem>>, vector<2x32xf32>
      %c0_21 = arith.constant 0 : index
      %c0_22 = arith.constant 0 : index
      %27 = vector.load %arg1[%c0_21, %c0_22] : memref<2x32xf32, #tpu.memory_space<vmem>>, vector<2x32xf32>
      %28 = arith.addf %26, %27 : vector<2x32xf32>
      %c0_23 = arith.constant 0 : index
      %c0_24 = arith.constant 0 : index
      %29 = vector.load %arg6[%c0_23, %c0_24] : memref<2x32xf32, #tpu.memory_space<vmem>>, vector<2x32xf32>
      tpu.vector_store %arg6[%c0_23, %c0_24], %28 {strides = array<i32>} : memref<2x32xf32, #tpu.memory_space<vmem>>, vector<2x32xf32>,
    } else {
    }
    return
  }
  func.func @transform_0(%arg0: i32) -> (i32, i32) {
    %c0_i32 = arith.constant 0 : i32
    %c0_i32_0 = arith.constant 0 : i32
    %c0_i32_1 = arith.constant 0 : i32
    return %c0_i32, %c0_i32_0 : i32, i32
  }
  func.func @transform_1(%arg0: i32) -> (i32, i32) {
    %c0_i32 = arith.constant 0 : i32
    %c0_i32_0 = arith.constant 0 : i32
    %c0_i32_1 = arith.constant 0 : i32
    return %c0_i32, %c0_i32_0 : i32, i32
  }
  func.func @transform_2(%arg0: i32) -> (i32, i32) {
    %c0_i32 = arith.constant 0 : i32
    %c0_i32_0 = arith.constant 0 : i32
    return %arg0, %c0_i32 : i32, i32
  }
  func.func @transform_3(%arg0: i32) -> (i32, i32) {
    %c0_i32 = arith.constant 0 : i32
    %c0_i32_0 = arith.constant 0 : i32
    return %arg0, %c0_i32 : i32, i32
  }
  func.func @transform_4(%arg0: i32) -> (i32, i32) {
    %c0_i32 = arith.constant 0 : i32
    %c0_i32_0 = arith.constant 0 : i32
    return %c0_i32, %arg0 : i32, i32
  }
  func.func @transform_5(%arg0: i32) -> (i32, i32) {
    %c0_i32 = arith.constant 0 : i32
    %c0_i32_0 = arith.constant 0 : i32
    %c0_i32_1 = arith.constant 0 : i32
    return %c0_i32, %c0_i32_0 : i32, i32
  }
}

module attributes {stable_mosaic.version = 11 : i64} {
  func.func @_rmsnorm_kernel(%arg0: memref<2x32xf32, #tpu.memory_space<vmem>>, %arg1: memref<1x32xf32, #tpu.memory_space<vmem>>, %arg2: memref<2x32xbf16, #tpu.memory_space<vmem>>) attributes {dimension_semantics = [], scalar_prefetch = 0 : i64, scratch_operands = 0 : i64, tpu.core_type = #tpu.core_type<tc>} {
    %c0 = arith.constant 0 : index
    %c0_0 = arith.constant 0 : index
    %0 = vector.load %arg0[%c0, %c0_0] : memref<2x32xf32, #tpu.memory_space<vmem>>, vector<2x32xf32>
    %1 = arith.mulf %0, %0 : vector<2x32xf32>
    %cst = arith.constant dense<0.000000e+00> : vector<2xf32>
    %2 = vector.multi_reduction <add>, %1, %cst [1] : vector<2x32xf32> to vector<2xf32>
    %3 = vector.shape_cast %2 : vector<2xf32> to vector<2x1xf32>
    %cst_1 = arith.constant 3.200000e+01 : f32
    %4 = vector.broadcast %cst_1 : f32 to vector<2x1xf32>
    %5 = arith.divf %3, %4 : vector<2x1xf32>
    %cst_2 = arith.constant 9.99999974E-6 : f32
    %6 = vector.broadcast %cst_2 : f32 to vector<2x1xf32>
    %7 = arith.addf %5, %6 : vector<2x1xf32>
    %8 = math.rsqrt %7 : vector<2x1xf32>
    %9 = vector.broadcast %8 : vector<2x1xf32> to vector<2x32xf32>
    %10 = arith.mulf %0, %9 : vector<2x32xf32>
    %c0_3 = arith.constant 0 : index
    %c0_4 = arith.constant 0 : index
    %11 = vector.load %arg1[%c0_3, %c0_4] : memref<1x32xf32, #tpu.memory_space<vmem>>, vector<1x32xf32>
    %12 = vector.broadcast %11 : vector<1x32xf32> to vector<2x32xf32>
    %13 = arith.mulf %10, %12 : vector<2x32xf32>
    %14 = arith.truncf %13 : vector<2x32xf32> to vector<2x32xbf16>
    %c0_5 = arith.constant 0 : index
    %c0_6 = arith.constant 0 : index
    %15 = vector.load %arg2[%c0_5, %c0_6] : memref<2x32xbf16, #tpu.memory_space<vmem>>, vector<2x32xbf16>
    tpu.vector_store %arg2[%c0_5, %c0_6], %14 {strides = array<i32>} : memref<2x32xbf16, #tpu.memory_space<vmem>>, vector<2x32xbf16>,
    return
  }
}

module attributes {stable_mosaic.version = 11 : i64} {
  func.func @_linear_kernel(%arg0: i32, %arg1: i32, %arg2: memref<2x32xbf16, #tpu.memory_space<vmem>>, %arg3: memref<64x32xbf16, #tpu.memory_space<vmem>>, %arg4: memref<2x64xf32, #tpu.memory_space<vmem>>, %arg5: memref<2x64xf32, #tpu.memory_space<vmem>>) attributes {dimension_semantics = [#tpu.dimension_semantics<parallel>, #tpu.dimension_semantics<arbitrary>], iteration_bounds = array<i64: 1, 1>, scalar_prefetch = 0 : i64, scratch_operands = 1 : i64, tpu.core_type = #tpu.core_type<tc>, window_params = [{transform_indices = @transform_0, window_bounds = array<i64: 2, 32>}, {transform_indices = @transform_1, window_bounds = array<i64: 64, 32>}, {transform_indices = @transform_2, window_bounds = array<i64: 2, 64>}]} {
    %c0_i32 = arith.constant 0 : i32
    %0 = arith.cmpi eq, %arg1, %c0_i32 : i32
    %1 = arith.extui %0 : i1 to i32
    %c0_i32_0 = arith.constant 0 : i32
    %2 = arith.cmpi ne, %1, %c0_i32_0 : i32
    scf.if %2 {
      %cst_10 = arith.constant 0.000000e+00 : f32
      %12 = vector.broadcast %cst_10 : f32 to vector<2x64xf32>
      %c0_11 = arith.constant 0 : index
      %c0_12 = arith.constant 0 : index
      %13 = vector.load %arg5[%c0_11, %c0_12] : memref<2x64xf32, #tpu.memory_space<vmem>>, vector<2x64xf32>
      tpu.vector_store %arg5[%c0_11, %c0_12], %12 {strides = array<i32>} : memref<2x64xf32, #tpu.memory_space<vmem>>, vector<2x64xf32>,
    } else {
    }
    %c0 = arith.constant 0 : index
    %c0_1 = arith.constant 0 : index
    %3 = vector.load %arg5[%c0, %c0_1] : memref<2x64xf32, #tpu.memory_space<vmem>>, vector<2x64xf32>
    %c0_2 = arith.constant 0 : index
    %c0_3 = arith.constant 0 : index
    %4 = vector.load %arg2[%c0_2, %c0_3] : memref<2x32xbf16, #tpu.memory_space<vmem>>, vector<2x32xbf16>
    %c0_4 = arith.constant 0 : index
    %c0_5 = arith.constant 0 : index
    %5 = vector.load %arg3[%c0_4, %c0_5] : memref<64x32xbf16, #tpu.memory_space<vmem>>, vector<64x32xbf16>
    %cst = arith.constant dense<0.000000e+00> : vector<2x64xf32>
    %6 = tpu.matmul %4, %5, %cst {dimension_numbers = #tpu.dot_dimension_numbers<[1], [1], [0], [0], [0, 0, 1, 0], [], []>} : vector<2x32xbf16>, vector<64x32xbf16>, vector<2x64xf32> -> vector<2x64xf32>
    %7 = arith.addf %3, %6 : vector<2x64xf32>
    %c0_6 = arith.constant 0 : index
    %c0_7 = arith.constant 0 : index
    %8 = vector.load %arg5[%c0_6, %c0_7] : memref<2x64xf32, #tpu.memory_space<vmem>>, vector<2x64xf32>
    tpu.vector_store %arg5[%c0_6, %c0_7], %7 {strides = array<i32>} : memref<2x64xf32, #tpu.memory_space<vmem>>, vector<2x64xf32>,
    %c0_i32_8 = arith.constant 0 : i32
    %9 = arith.cmpi eq, %arg1, %c0_i32_8 : i32
    %10 = arith.extui %9 : i1 to i32
    %c0_i32_9 = arith.constant 0 : i32
    %11 = arith.cmpi ne, %10, %c0_i32_9 : i32
    scf.if %11 {
      %c0_10 = arith.constant 0 : index
      %c0_11 = arith.constant 0 : index
      %12 = vector.load %arg5[%c0_10, %c0_11] : memref<2x64xf32, #tpu.memory_space<vmem>>, vector<2x64xf32>
      %c0_12 = arith.constant 0 : index
      %c0_13 = arith.constant 0 : index
      %13 = vector.load %arg4[%c0_12, %c0_13] : memref<2x64xf32, #tpu.memory_space<vmem>>, vector<2x64xf32>
      tpu.vector_store %arg4[%c0_12, %c0_13], %12 {strides = array<i32>} : memref<2x64xf32, #tpu.memory_space<vmem>>, vector<2x64xf32>,
    } else {
    }
    return
  }
  func.func @transform_0(%arg0: i32, %arg1: i32) -> (i32, i32) {
    %c0_i32 = arith.constant 0 : i32
    %c0_i32_0 = arith.constant 0 : i32
    return %c0_i32, %arg1 : i32, i32
  }
  func.func @transform_1(%arg0: i32, %arg1: i32) -> (i32, i32) {
    %c0_i32 = arith.constant 0 : i32
    return %arg0, %arg1 : i32, i32
  }
  func.func @transform_2(%arg0: i32, %arg1: i32) -> (i32, i32) {
    %c0_i32 = arith.constant 0 : i32
    %c0_i32_0 = arith.constant 0 : i32
    return %c0_i32, %arg0 : i32, i32
  }
}

</mosaic_0001>

<bundles_post_ra>
// kernel: fwd.12
= control target key start
LH: loop header
LB: loop body
LE: loop exit
PB: predicated region body
PF: predicated region fallthrough
CT: control target
= control target key end

     0   :  { %vm37_vm0 = vcmask 261120   ;;  %vm19_vm1 = vcmask 254976   ;;  %v86_v1 = vmov 0.0   ;;  %s125_s1 = inlined_call_operand.vmem [shape: bf16[32,32], index: 1, kind: input, shape index: {}]   ;;  %s126_s0 = inlined_call_operand.vmem [shape: bf16[2,32], index: 0, kind: input, shape index: {}]   ;;  %s127_s2 = inlined_call_operand.vmem [shape: f32[2,32], index: 2, kind: input, shape index: {}]   ;;  %s128_s3 = inlined_call_operand.vmem [shape: f32[2,32], index: 3, kind: output, shape index: {}]  }
   0x1   :  { %v84_v0 = vld [vmem:[%s125_s1 + $0x8] sm:$0xff]  ;;  %20 = vst.msk [vmem:[#allocation2] sm:$0x3] %vm19_vm1, %v86_v1  ;;  %v83_v3 = vld [vmem:[%s125_s1] sm:$0xff] }
   0x2   :  { %v45_v2 = vsel %vm37_vm0, %v84_v0, 0  ;;  %v42_v4 = vsel %vm37_vm0, %v83_v3, 0  ;;  %v22_v5 = vld [vmem:[%s126_s0] sm:$0x1] }
   0x3   :  { %53 = vmatpush.bf16.xpose.msra.mxu0 %v45_v2  ;;  %v67_v9 = vld [vmem:[%s127_s2] sm:$0x3] }
   0x8   :  { %v21_v6 = vld [vmem:[#allocation2] sm:$0x3] }
   0xb   :  { %54 = vmatpush.bf16.xpose.msra.mxu0 %v42_v4 }
  0x12   :  { %82 = vmatmul.msk.bf16.vlgmr.msra.gmra.mxu0 %vm37_vm0, %v22_v5 }
  0x8f   :  { %v56_v7 = vpop.f32.mrf.mxu0 }
  0x90   :  { %v60_v8 = vadd.f32 %v56_v7, %v21_v6 }
  0x92   :  { %62 = vst.msk [vmem:[#allocation2] sm:$0x3] %vm19_vm1, %v60_v8 }
  0x97   :  { %v58_v10 = vpop.f32.mrf.mxu0 }
  0x99   :  { %v66_v11 = vld [vmem:[#allocation2] sm:$0x3] }
  0x9a   :  { %v68_v12 = vadd.f32 %v67_v9, %v66_v11 }
  0x9c   :  { %69 = vst.msk [vmem:[%s128_s3] sm:$0x3] %vm19_vm1, %v68_v12 }

// kernel: fwd.11
= control target key start
LH: loop header
LB: loop body
LE: loop exit
PB: predicated region body
PF: predicated region fallthrough
CT: control target
= control target key end

     0   :  { %s482_s12 = smov 0   ;;  %s524_s0 = inlined_call_operand.vmem [shape: bf16[2,4,8], index: 0, kind: input, shape index: {}]   ;;  %s525_s1 = inlined_call_operand.vmem [shape: bf16[2,2,4,8], index: 1, kind: input, shape index: {}]   ;;  %s526_s2 = inlined_call_operand.vmem [shape: bf16[2,2,4,8], index: 2, kind: input, shape index: {}]   ;;  %s527_s3 = inlined_call_operand.vmem [shape: bf16[2,4,8], index: 3, kind: output, shape index: {}]  }
   0x1 LB: > { %s417_s13 = sadd.s32 4294967295, %s460_s12   ;;  %p421_p0 = scmp.ge.s32.totalorder %s460_s12, 1  ;;  %s460_s12 = sphi %s482_s12, %s13_s12  }
   0x2   : > { %p156_p1 = scmp.lt.s32.totalorder %s460_s12, 3 }
   0x4   : > { %p157_p2 = pnand %p421_p0, %p156_p1 }
   0x5   : > { %p188_p3 = scmp.lt.s32.totalorder (!%p157_p2), %s417_s13, 1 }
   0x6   : > { %160 = sbr.rel (%p157_p2) target bundleno = 557 (0x22d), region = 32 }
   0xb   : > { %s529_s13 = smov (!%p188_p3, %s417_s13), 1  ;;  %vm210_vm0 = vcmask 64512   ;;  %vm231_vm1 = vcmask 25600   ;;  %vm248_vm2 = vcmask 1041408   ;;  %vm244_vm3 = vcmask 31744  }
   0xc   : > { %s422_s14 = sshll.u32 %s529_s13, 1  ;;  %s436_s15 = sshll.u32 %s529_s13, 2  ;;  %vm266_vm4 = vcmask 57344   ;;  %vm338_vm5 = vcmask 58369  }
   0xd   : > { %s191_s18 = scalar_lea.vmem %s524_s0, %s422_s14  ;;  %s196_s21 = scalar_lea.vmem %s525_s1, %s436_s15 }
   0xe   : > { %v268_v0 = vld [vmem:[%s191_s18] sm:$0x2]  ;;  %v430_v1 = vld [vmem:[%s196_s21 + $0x2] sm:$0x3]  ;;  %v207_v5 = vld [vmem:[%s191_s18] sm:$0x1]  ;;  %s201_s24 = scalar_lea.vmem %s526_s2, %s436_s15  ;;  %s205_s27 = scalar_lea.vmem %s527_s3, %s422_s14 }
   0xf   : > { %v208_v2 = vld [vmem:[%s196_s21] sm:$0x3]  ;;  %274 = vst [vmem:[#allocation1] ss:$4 sm:$0xff] %v268_v0  ;;  %v282_v3 = vsel %vm210_vm0, %v430_v1, 0 }
  0x10   : > { %v215_v4 = vsel %vm210_vm0, %v208_v2, 0  ;;  %291 = vmatpush.bf16.xpose.msra.mxu2 %v282_v3  ;;  %v431_v26 = vld [vmem:[%s201_s24 + $0x2] sm:$0x3]  ;;  %v209_v28 = vld [vmem:[%s201_s24] sm:$0x3] }
  0x11   : > { %224 = vmatpush.bf16.xpose.msra.mxu0 %v215_v4  ;;  %v314_v27 = vsel %vm248_vm2, %v431_v26, 0  ;;  %v250_v29 = vsel %vm248_vm2, %v209_v28, 0 }
  0x12   : > { %323 = vmatpush.bf16.msra.mxu3 %v314_v27  ;;  %259 = vmatpush.bf16.msra.mxu1 %v250_v29 }
  0x16   : > { %v275_v6 = vld.sshfl [vmem:[#allocation1] sm:$0xff pattern:$0x73625140] }
  0x17   : > { %v277_v7 = vrot.slane %v275_v6, 1 }
  0x18   : > { %428 = vmatmul.msk.bf16.vlgmr.msra.gmra.mxu0 %vm210_vm0, %v207_v5 }
  0x19   : > { %432 = vmatmul.msk.bf16.vlgmr.msra.gmra.mxu2 %vm210_vm0, %v277_v7 }
  0x95   : > { %v226_v8 = vpop.f32.mrf.mxu0 }
  0x96   : > { %v230_v13 = vmul.f32 0.35355338, %v226_v8 }
  0x98   : > { %v232_v15 = vsel %vm231_vm1, %v230_v13, -inf }
  0x9c   : > { %v293_v9 = vpop.f32.mrf.mxu2 }
  0x9d   : > { %v228_v10 = vpop.f32.mrf.mxu0  ;;  %v297_v11 = vmul.f32 0.35355338, %v293_v9 }
  0x9f   : > { %v298_v12 = vsel %vm231_vm1, %v297_v11, -inf }
  0xa0   : > { %299 = vmax.xlane.f32.xlu0 %v298_v12 }
  0xa4   : > { %v295_v14 = vpop.f32.mrf.mxu2 }
  0xa8   : > { %233 = vmax.xlane.f32.xlu0 %v232_v15 }
 0x113   : > { %v300_v16 = vpop.xlane.xlu0 %299 }
 0x114   : > { %v301_v17 = vsub.f32 %v297_v11, %v300_v16 }
 0x116   : > { %v302_v18 = vmul.f32 1.442695, %v301_v17 }
 0x118   : > { %446 = vpow2.f32 %v302_v18 }
 0x11b   : > { %v234_v19 = vpop.xlane.xlu0 %233 }
 0x11c   : > { %v235_v20 = vsub.f32 %v230_v13, %v234_v19 }
 0x11e   : > { %v447_v21 = vpop.eup %446  ;;  %v236_v22 = vmul.f32 1.442695, %v235_v20 }
 0x11f   : > { %v304_v23 = vsel %vm231_vm1, %v447_v21, 0.0 }
 0x120   : > { %448 = vpow2.f32 %v236_v22  ;;  %305 = vadd.xlane.f32.xlu1 %v304_v23 }
 0x126   : > { %v449_v24 = vpop.eup %448 }
 0x127   : > { %v238_v25 = vsel %vm231_vm1, %v449_v24, 0.0 }
 0x128   : > { %239 = vadd.xlane.f32.xlu1 %v238_v25 }
 0x193   : > { %v306_v30 = vpop.xlane.xlu1 %305 }
 0x194   : > { %450 = vrcp.f32 %v306_v30 }
 0x19a   : > { %v451_v31 = vpop.eup %450 }
 0x19b   : > { %v240_v32 = vpop.xlane.xlu1 %239  ;;  %v308_v33 = vmul.f32 %v451_v31, %v447_v21 }
 0x19c   : > { %452 = vrcp.f32 %v240_v32 }
 0x19d   : > { %v309_v34 = vpack.c.bf16 %v308_v33, %v308_v33 }
 0x19f   : > { %433 = vmatmul.msk.bf16.vlgmr.msra.gmra.mxu3 %vm244_vm3, %v309_v34 }
 0x1a2   : > { %v453_v35 = vpop.eup %452 }
 0x1a3   : > { %v242_v36 = vmul.f32 %v453_v35, %v449_v24 }
 0x1a5   : > { %v243_v37 = vpack.c.bf16 %v242_v36, %v242_v36 }
 0x1a7   : > { %429 = vmatmul.msk.bf16.vlgmr.msra.gmra.mxu1 %vm244_vm3, %v243_v37 }
 0x222   : > { %v325_v38 = vpop.f32.mrf.mxu3 }
 0x223   : > { %v329_v39 = vpack.c.bf16 %v325_v38, %v325_v38 }
 0x224   : > { %v261_v40 = vpop.f32.mrf.mxu1 }
 0x225   : > { %v331_v41 = vrot.slane %v329_v39, 2  ;;  %v265_v42 = vpack.c.bf16 %v261_v40, %v261_v40 }
 0x227   : > { %v334_v43 = vsel %vm248_vm2, %v329_v39, %v331_v41  ;;  %267 = vst.msk [vmem:[%s205_s27] sm:$0x1] %vm266_vm4, %v265_v42 }
 0x228   : > { %v336_v44 = vrot.slane %v334_v43, 7 }
 0x22a   : > { %339 = vst.msk [vmem:[%s205_s27] sm:$0x2] %vm338_vm5, %v336_v44  ;;  %v327_v45 = vpop.f32.mrf.mxu3 }
 0x22c   : > { %v263_v46 = vpop.f32.mrf.mxu1 }
 0x22d PF: > { %s13_s12 = sadd.s32 1, %s460_s12  }
 0x22e   : > { %p10_p4 = scmp.ge.s32.totalorder %s13_s12, 4  }
 0x230   :  { %12 = sbr.rel (!%p10_p4) target bundleno = 1 (0x1), region = 70 }

// kernel: fwd.10
= control target key start
LH: loop header
LB: loop body
LE: loop exit
PB: predicated region body
PF: predicated region fallthrough
CT: control target
= control target key end

     0   :  { %vm34_vm0 = vcmask 254976   ;;  %vm72_vm1 = vcmask 261120   ;;  %vm39_vm2 = vcmask 1024   ;;  %v462_v0 = vmov 0.0   ;;  %s463_s20 = smov 4   ;;  %s464_s21 = smov 20   ;;  %s694_s0 = inlined_call_operand.vmem [shape: f32[2,32], index: 0, kind: input, shape index: {}]   ;;  %s695_s1 = inlined_call_operand.vmem [shape: f32[1,32], index: 1, kind: input, shape index: {}]   ;;  %s696_s2 = inlined_call_operand.vmem [shape: bf16[32,32], index: 2, kind: input, shape index: {}]   ;;  %s697_s4 = inlined_call_operand.vmem [shape: bf16[16,32], index: 4, kind: input, shape index: {}]   ;;  %s698_s5 = inlined_call_operand.vmem [shape: f32[1,4], index: 5, kind: input, shape index: {}]   ;;  %s699_s6 = inlined_call_operand.vmem [shape: f32[1,4], index: 6, kind: input, shape index: {}]   ;;  %s700_s3 = inlined_call_operand.vmem [shape: bf16[16,32], index: 3, kind: input, shape index: {}]   ;;  %s701_s9 = inlined_call_operand.vmem [shape: bf16[2,16], index: 9, kind: output, shape index: {2}]   ;;  %s702_s7 = inlined_call_operand.vmem [shape: bf16[2,32], index: 7, kind: output, shape index: {0}]   ;;  %s703_s8 = inlined_call_operand.vmem [shape: bf16[2,16], index: 8, kind: output, shape index: {1}]  }
   0x1   :  { %35 = vst.msk [vmem:[#allocation2] sm:$0x3] %vm34_vm0, %v462_v0  ;;  %v41_v1 = vld [vmem:[%s694_s0] sm:$0x3]  ;;  %v440_v4 = vld [vmem:[%s696_s2 + $0x8] sm:$0xff]  ;;  %v465_v16 = vmov 0  }
   0x2   :  { %v43_v2 = vmul.f32 %v41_v1, %v41_v1  ;;  %v455_v3 = vld [vmem:[%s695_s1] ss:$0 sm:$0xff]  ;;  %40 = vst.msk [vmem:[#allocation5] sm:$0x3] %vm39_vm2, %v462_v0  ;;  %v80_v8 = vsel %vm72_vm1, %v440_v4, 0  ;;  %454 = vset.pattern.permute.xlu0 %v465_v16  ;;  %v468_v18 = vmov 32.0  }
   0x3   :  { %v442_v5 = vld [vmem:[%s697_s4] sm:$0xff]  ;;  %v55_v7 = vmul.f32 %v455_v3, %v41_v1  ;;  %88 = vmatpush.bf16.xpose.msra.mxu0 %v80_v8  ;;  %458 = vrcp.f32 %v468_v18  ;;  %s469_s23 = smov 8   ;;  %s470_s24 = smov 16   ;;  %vm36_vm7 = vcmask 123904   ;;  %vm185_vm8 = vcmask 122880  }
   0x4   :  { %v45_v6 = vsel %vm34_vm0, %v43_v2, 0.0  ;;  %v133_v9 = vsel %vm72_vm1, %v442_v5, 0  ;;  %v439_v10 = vld [vmem:[%s696_s2] sm:$0xff]  ;;  %s466_s2 = smov 12   ;;  %37 = vst.msk [vmem:[#allocation3] sm:$0x3] %vm36_vm7, %v462_v0 }
   0x5   :  { %46 = vadd.xlane.f32.xlu0 %v45_v6  ;;  %142 = vmatpush.bf16.xpose.msra.mxu2 %v133_v9  ;;  %v77_v11 = vsel %vm72_vm1, %v439_v10, 0  ;;  %v549_v12 = vld [vmem:[%s698_s5] ss:$0 sm:$0xff]  ;;  %v56_v13 = vpack.c.bf16 %v55_v7, %v55_v7  ;;  %38 = vst.msk [vmem:[#allocation4] sm:$0x3] %vm36_vm7, %v462_v0  ;;  %s472_s27 = smov 124  }
   0x6   :  { %v441_v14 = vld [vmem:[%s700_s3] sm:$0xff]  ;;  %209 = vrot.lane.b32.xlu1 %v549_v12, %s463_s20  ;;  %292 = vrot.lane.b32.xlu2 %v549_v12, %s464_s21  ;;  %s467_s3 = smov 28   ;;  %vm221_vm9 = vcmask 1040384   ;;  %vm206_vm10 = vcmask 24576   ;;  %vm229_vm11 = vcmask 57376   ;;  %vm245_vm12 = vcmask 90176  }
   0x7   :  { %v106_v15 = vsel %vm72_vm1, %v441_v14, 0  ;;  %v567_v17 = vld [vmem:[%s699_s6] ss:$0 sm:$0xff]  ;;  %s471_s6 = smov 24   ;;  %vm270_vm13 = vcmask 122976   ;;  %vm286_vm14 = vcmask 155776  }
   0x8   :  { %115 = vmatpush.bf16.xpose.msra.mxu1 %v106_v15  ;;  %v57_v38 = vld [vmem:[#allocation2] sm:$0x3]  ;;  %vm311_vm15 = vcmask 188576  }
   0x9   :  { %v459_v19 = vpop.eup %458  ;;  %v42_v22 = vld [vmem:[#allocation5] sm:$0x3] }
   0xa   :  { %v155_v20 = vmul.f32 32.0, %v459_v19  ;;  %vm159_vm3 = vweird.f32 %v459_v19 }
   0xb   :  { %89 = vmatpush.bf16.xpose.msra.mxu0 %v77_v11  ;;  %v97_v42 = vld [vmem:[#allocation3] sm:$0x3] }
   0xc   :  { %438 = vmatmul.msk.bf16.vlgmr.msra.gmra.mxu2 %vm72_vm1, %v56_v13  ;;  %v156_v21 = vsub.f32 1.0, %v155_v20  ;;  %v124_v41 = vld [vmem:[#allocation4] sm:$0x3] }
   0xe   :  { %251 = vrot.lane.b32.xlu1 %v549_v12, %s466_s2  ;;  %333 = vrot.lane.b32.xlu2 %v549_v12, %s467_s3  ;;  %v157_v24 = vmul.f32 %v459_v19, %v156_v21 }
   0xf   :  { %433 = vmatmul.msk.bf16.vlgmr.msra.gmra.mxu1 %vm72_vm1, %v56_v13 }
  0x10   :  { %v158_v26 = vadd.f32 %v459_v19, %v157_v24 }
  0x12   :  { %428 = vmatmul.msk.bf16.vlgmr.msra.gmra.mxu0 %vm72_vm1, %v56_v13  ;;  %v160_v27 = vsel %vm159_vm3, %v459_v19, %v158_v26  ;;  %vm352_vm1 = vcmask 254176  }
  0x16   :  { %196 = vrot.lane.b32.xlu1 %v567_v17, %s463_s20  ;;  %235 = vrot.lane.b32.xlu2 %v567_v17, %s466_s2 }
  0x1e   :  { %247 = vrot.lane.b32.xlu1 %v567_v17, %s469_s23  ;;  %288 = vrot.lane.b32.xlu2 %v567_v17, %s470_s24 }
  0x26   :  { %276 = vrot.lane.b32.xlu1 %v567_v17, %s464_s21 }
  0x60   :  { %v293_v52 = vpop.permute.xlu2 %292 }
  0x68   :  { %v334_v59 = vpop.permute.xlu2 %333 }
  0x70   :  { %v236_v8 = vpop.permute.xlu2 %235 }
  0x78   :  { %v47_v23 = vpop.xlane.xlu0 %46  ;;  %v210_v50 = vpop.permute.xlu1 %209 }
  0x79   :  { %v48_v25 = vadd.f32 %v47_v23, %v42_v22  ;;  %v289_v14 = vpop.permute.xlu2 %288 }
  0x7b   :  { %50 = vst.msk [vmem:[#allocation5] sm:$0x3] %vm39_vm2, %v48_v25 }
  0x80   :  { %v252_v51 = vpop.permute.xlu1 %251 }
  0x82   :  { %v153_v28 = vld [vmem:[#allocation5] sm:$0x3] }
  0x83   :  { %v161_v29 = vmul.f32 %v160_v27, %v153_v28 }
  0x85   :  { %v162_v30 = vadd.f32 1e-05, %v161_v29 }
  0x87   :  { %460 = vrsqrt.f32 %v162_v30  ;;  %vm169_vm5 = vweird.f32 %v162_v30 }
  0x88   :  { %v197_v53 = vpop.permute.xlu1 %196 }
  0x8c   :  { %v117_v46 = vpop.f32.mrf.mxu1 }
  0x8d   :  { %v461_v31 = vpop.eup %460  ;;  %v121_v47 = vadd.f32 %v117_v46, %v97_v42 }
  0x8e   :  { %v164_v32 = vmul.f32 %v461_v31, %v162_v30  ;;  %vm170_vm4 = vweird.f32 %v461_v31 }
  0x8f   :  { %vm171_vm6 = vmor %vm169_vm5, %vm170_vm4  ;;  %v91_v39 = vpop.f32.mrf.mxu0  ;;  %v144_v43 = vpop.f32.mrf.mxu2  ;;  %123 = vst.msk [vmem:[#allocation3] sm:$0x3] %vm36_vm7, %v121_v47 }
  0x90   :  { %v165_v33 = vmul.f32 %v461_v31, %v164_v32  ;;  %v95_v40 = vadd.f32 %v91_v39, %v57_v38  ;;  %v148_v44 = vadd.f32 %v144_v43, %v124_v41  ;;  %v592_v1 = vpop.permute.xlu1 %247 }
  0x92   :  { %v166_v34 = vmul.f32 0.5, %v165_v33  ;;  %96 = vst.msk [vmem:[#allocation2] sm:$0x3] %vm34_vm0, %v95_v40  ;;  %vm327_vm0 = vcmask 221376  }
  0x93   :  { %149 = vst.msk [vmem:[#allocation4] sm:$0x3] %vm36_vm7, %v148_v44 }
  0x94   :  { %v167_v35 = vsub.f32 1.5, %v166_v34  ;;  %v119_v49 = vpop.f32.mrf.mxu1 }
  0x96   :  { %v168_v36 = vmul.f32 %v461_v31, %v167_v35  ;;  %v180_v0 = vld [vmem:[#allocation3] sm:$0x3] }
  0x97   :  { %v93_v45 = vpop.f32.mrf.mxu0  ;;  %v146_v48 = vpop.f32.mrf.mxu2 }
  0x98   :  { %v172_v37 = vsel %vm171_vm6, %v461_v31, %v168_v36  ;;  %v277_v5 = vpop.permute.xlu1 %276 }
  0x99   :  { %176 = vperm.xlu0 %454, %v172_v37   ;;  %v173_v54 = vld [vmem:[#allocation2] sm:$0x3] }
  0x9a   :  { %v182_v55 = vld [vmem:[#allocation4] sm:$0x3] }
  0xa1   :  { %329 = vrot.lane.b32.xlu0 %v567_v17, %s471_s6 }
 0x10b   :  { %v177_v56 = vpop.permute.xlu0 %176 }
 0x10c   :  { %v583_v57 = vmul.f32 %v177_v56, %v173_v54  ;;  %v183_v58 = vmul.f32 %v182_v55, %v177_v56  ;;  %v596_v2 = vmul.f32 %v180_v0, %v177_v56 }
 0x10e   :  { %v184_v60 = vpack.c.bf16 %v183_v58, %v183_v58  ;;  %v336_v61 = vmul.f32 %v334_v59, %v583_v57  ;;  %v254_v62 = vmul.f32 %v252_v51, %v583_v57  ;;  %v212_v63 = vmul.f32 %v210_v50, %v583_v57 }
 0x10f   :  { %v295_v3 = vmul.f32 %v293_v52, %v583_v57  ;;  %v364_v4 = vmul.f32 %v210_v50, %v596_v2  ;;  %v279_v6 = vmul.f32 %v277_v5, %v583_v57  ;;  %v391_v7 = vmul.f32 %v252_v51, %v596_v2 }
 0x110   :  { %186 = vst.msk [vmem:[%s701_s9] sm:$0x1] %vm185_vm8, %v184_v60  ;;  %338 = vrot.lane.b32.xlu0 %v336_v61, %s472_s27  ;;  %256 = vrot.lane.b32.xlu1 %v254_v62, %s472_s27  ;;  %v199_v9 = vmul.f32 %v197_v53, %v583_v57  ;;  %v238_v10 = vmul.f32 %v236_v8, %v583_v57 }
 0x111   :  { %214 = vrot.lane.b32.xlu2 %v212_v63, %s472_s27  ;;  %v355_v11 = vmul.f32 %v197_v53, %v596_v2  ;;  %v382_v13 = vmul.f32 %v236_v8, %v596_v2  ;;  %v208_v15 = vmul.f32 %v567_v17, %v583_v57  ;;  %v291_v23 = vmul.f32 %v289_v14, %v583_v57 }
 0x112   :  { %v250_v30 = vmul.f32 %v592_v1, %v583_v57  ;;  %v192_v42 = vmul.f32 %v549_v12, %v583_v57  ;;  %v363_v43 = vmul.f32 %v567_v17, %v596_v2  ;;  %v390_v52 = vmul.f32 %v592_v1, %v596_v2 }
 0x113   :  { %v330_v25 = vpop.permute.xlu0 %329  ;;  %v354_v53 = vmul.f32 %v549_v12, %v596_v2 }
 0x114   :  { %v332_v34 = vmul.f32 %v330_v25, %v583_v57 }
 0x118   :  { %231 = vrot.lane.b32.xlu0 %v549_v12, %s469_s23  ;;  %366 = vrot.lane.b32.xlu1 %v364_v4, %s472_s27 }
 0x119   :  { %297 = vrot.lane.b32.xlu2 %v295_v3, %s472_s27 }
 0x120   :  { %281 = vrot.lane.b32.xlu0 %v279_v6, %s472_s27  ;;  %393 = vrot.lane.b32.xlu1 %v391_v7, %s472_s27 }
 0x121   :  { %317 = vrot.lane.b32.xlu2 %v567_v17, %s467_s3 }
 0x128   :  { %313 = vrot.lane.b32.xlu1 %v549_v12, %s471_s6 }
 0x129   :  { %272 = vrot.lane.b32.xlu2 %v549_v12, %s470_s24 }
 0x130   :  { %240 = vrot.lane.b32.xlu1 %v238_v10, %s472_s27 }
 0x131   :  { %201 = vrot.lane.b32.xlu2 %v199_v9, %s472_s27 }
 0x139   :  { %357 = vrot.lane.b32.xlu2 %v355_v11, %s472_s27 }
 0x141   :  { %384 = vrot.lane.b32.xlu2 %v382_v13, %s472_s27 }
 0x16b   :  { %v215_v16 = vpop.permute.xlu2 %214 }
 0x16c   :  { %v217_v18 = vadd.f32 %v215_v16, %v208_v15 }
 0x16e   :  { %v218_v19 = vpack.c.bf16 %v217_v18, %v217_v18 }
 0x170   :  { %v220_v20 = vrot.slane %v218_v19, 3 }
 0x172   :  { %v224_v21 = vsel %vm221_vm9, %v218_v19, %v220_v20 }
 0x173   :  { %v298_v22 = vpop.permute.xlu2 %297  ;;  %226 = vrot.lane.b32.xlu0 %v224_v21, %s463_s20 }
 0x174   :  { %v300_v24 = vadd.f32 %v298_v22, %v291_v23 }
 0x176   :  { %v301_v28 = vpack.c.bf16 %v300_v24, %v300_v24 }
 0x178   :  { %v303_v29 = vrot.slane %v301_v28, 3 }
 0x17a   :  { %v306_v36 = vsel %vm221_vm9, %v301_v28, %v303_v29 }
 0x17b   :  { %v318_v26 = vpop.permute.xlu2 %317 }
 0x17c   :  { %v320_v27 = vmul.f32 %v318_v26, %v583_v57 }
 0x17e   :  { %322 = vrot.lane.b32.xlu1 %v320_v27, %s472_s27 }
 0x182   :  { %v339_v31 = vpop.permute.xlu0 %338  ;;  %v257_v32 = vpop.permute.xlu1 %256 }
 0x183   :  { %v273_v33 = vpop.permute.xlu2 %272  ;;  %v259_v35 = vadd.f32 %v257_v32, %v250_v30  ;;  %v341_v38 = vadd.f32 %v339_v31, %v332_v34 }
 0x184   :  { %v275_v15 = vmul.f32 %v273_v33, %v583_v57 }
 0x185   :  { %v260_v37 = vpack.c.bf16 %v259_v35, %v259_v35  ;;  %v342_v40 = vpack.c.bf16 %v341_v38, %v341_v38 }
 0x186   :  { %308 = vrot.lane.b32.xlu1 %v306_v36, %s463_s20 }
 0x187   :  { %v262_v39 = vrot.slane %v260_v37, 3  ;;  %v344_v48 = vrot.slane %v342_v40, 3 }
 0x189   :  { %v265_v41 = vsel %vm221_vm9, %v260_v37, %v262_v39  ;;  %v347_v54 = vsel %vm221_vm9, %v342_v40, %v344_v48 }
 0x18a   :  { %267 = vrot.lane.b32.xlu0 %v265_v41, %s463_s20  ;;  %v367_v45 = vpop.permute.xlu1 %366  ;;  %v232_v63 = vpop.permute.xlu0 %231 }
 0x18b   :  { %v202_v44 = vpop.permute.xlu2 %201  ;;  %v369_v47 = vadd.f32 %v367_v45, %v363_v43  ;;  %v234_v4 = vmul.f32 %v232_v63, %v583_v57  ;;  %v381_v9 = vmul.f32 %v232_v63, %v596_v2 }
 0x18c   :  { %v204_v46 = vsub.f32 %v192_v42, %v202_v44 }
 0x18d   :  { %v370_v50 = vpack.c.bf16 %v369_v47, %v369_v47 }
 0x18e   :  { %v205_v49 = vpack.c.bf16 %v204_v46, %v204_v46 }
 0x18f   :  { %v372_v51 = vrot.slane %v370_v50, 3 }
 0x190   :  { %207 = vst.msk [vmem:[%s702_s7] sm:$0x1] %vm206_vm10, %v205_v49 }
 0x191   :  { %v375_v17 = vsel %vm221_vm9, %v370_v50, %v372_v51 }
 0x192   :  { %v394_v55 = vpop.permute.xlu1 %393  ;;  %377 = vrot.lane.b32.xlu2 %v375_v17, %s463_s20  ;;  %349 = vrot.lane.b32.xlu0 %v347_v54, %s463_s20  ;;  %v282_v1 = vpop.permute.xlu0 %281 }
 0x193   :  { %v358_v56 = vpop.permute.xlu2 %357  ;;  %v396_v58 = vadd.f32 %v394_v55, %v390_v52  ;;  %v284_v16 = vsub.f32 %v275_v15, %v282_v1 }
 0x194   :  { %v360_v59 = vsub.f32 %v354_v53, %v358_v56 }
 0x195   :  { %v397_v60 = vpack.c.bf16 %v396_v58, %v396_v58  ;;  %v285_v19 = vpack.c.bf16 %v284_v16, %v284_v16 }
 0x196   :  { %v361_v61 = vpack.c.bf16 %v360_v59, %v360_v59 }
 0x197   :  { %v399_v62 = vrot.slane %v397_v60, 3 }
 0x198   :  { %362 = vst.msk [vmem:[%s703_s8] sm:$0x1] %vm206_vm10, %v361_v61 }
 0x199   :  { %v402_v12 = vsel %vm221_vm9, %v397_v60, %v399_v62 }
 0x19a   :  { %404 = vrot.lane.b32.xlu1 %v402_v12, %s463_s20  ;;  %v314_v0 = vpop.permute.xlu1 %313 }
 0x19b   :  { %v385_v6 = vpop.permute.xlu2 %384  ;;  %v316_v2 = vmul.f32 %v314_v0, %v583_v57 }
 0x19c   :  { %v387_v10 = vsub.f32 %v381_v9, %v385_v6 }
 0x19e   :  { %v388_v11 = vpack.c.bf16 %v387_v10, %v387_v10 }
 0x1a2   :  { %v241_v3 = vpop.permute.xlu1 %240 }
 0x1a3   :  { %v243_v5 = vsub.f32 %v234_v4, %v241_v3 }
 0x1a5   :  { %v244_v7 = vpack.c.bf16 %v243_v5, %v243_v5 }
 0x1e5   :  { %v227_v8 = vpop.permute.xlu0 %226 }
 0x1e6   :  { %230 = vst.msk [vmem:[%s702_s7] sm:$0x1] %vm229_vm11, %v227_v8 }
 0x1e7   :  { %246 = vst.msk [vmem:[%s702_s7] sm:$0x1] %vm245_vm12, %v244_v7 }
 0x1ec   :  { %v378_v13 = vpop.permute.xlu2 %377 }
 0x1ed   :  { %380 = vst.msk [vmem:[%s703_s8] sm:$0x1] %vm229_vm11, %v378_v13 }
 0x1ee   :  { %389 = vst.msk [vmem:[%s703_s8] sm:$0x1] %vm245_vm12, %v388_v11 }
 0x1f0   :  { %v323_v14 = vpop.permute.xlu1 %322 }
 0x1f1   :  { %v325_v18 = vsub.f32 %v316_v2, %v323_v14 }
 0x1f3   :  { %v326_v21 = vpack.c.bf16 %v325_v18, %v325_v18 }
 0x1f8   :  { %v309_v22 = vpop.permute.xlu1 %308 }
 0x1fc   :  { %v268_v20 = vpop.permute.xlu0 %267 }
 0x1fd   :  { %271 = vst.msk [vmem:[%s702_s7] sm:$0x1] %vm270_vm13, %v268_v20 }
 0x1fe   :  { %287 = vst.msk [vmem:[%s702_s7] sm:$0x1] %vm286_vm14, %v285_v19 }
 0x1ff   :  { %312 = vst.msk [vmem:[%s702_s7] sm:$0x1] %vm311_vm15, %v309_v22 }
 0x200   :  { %328 = vst.msk [vmem:[%s702_s7] sm:$0x1] %vm327_vm0, %v326_v21 }
 0x204   :  { %v350_v57 = vpop.permute.xlu0 %349 }
 0x205   :  { %353 = vst.msk [vmem:[%s702_s7] sm:$0x1] %vm352_vm1, %v350_v57 }
 0x20c   :  { %v405_v23 = vpop.permute.xlu1 %404 }
 0x20d   :  { %407 = vst.msk [vmem:[%s703_s8] sm:$0x1] %vm270_vm13, %v405_v23 }

// kernel: fwd.13
= control target key start
LH: loop header
LB: loop body
LE: loop exit
PB: predicated region body
PF: predicated region fallthrough
CT: control target
= control target key end

     0   :  { %vm27_vm0 = vcmask 254976   ;;  %v369_v1 = vmov 0.0   ;;  %vm103_vm1 = vcmask 261120   ;;  %v370_v14 = vmov 32.0   ;;  %s481_s0 = inlined_call_operand.vmem [shape: f32[2,32], index: 0, kind: input, shape index: {}]   ;;  %s482_s2 = inlined_call_operand.vmem [shape: bf16[96,32], index: 2, kind: input, shape index: {}]   ;;  %s483_s3 = inlined_call_operand.vmem [shape: bf16[96,32], index: 3, kind: input, shape index: {}]   ;;  %s484_s1 = inlined_call_operand.vmem [shape: f32[1,32], index: 1, kind: input, shape index: {}]   ;;  %s485_s4 = inlined_call_operand.vmem [shape: bf16[32,96], index: 4, kind: input, shape index: {}]   ;;  %s486_s5 = inlined_call_operand.vmem [shape: f32[2,32], index: 5, kind: output, shape index: {}]  }
   0x1   :  { %v404_v0 = vld [vmem:[%s481_s0] sm:$0x3]  ;;  %59 = vst.msk [vmem:[#allocation2] sm:$0x3] %vm27_vm0, %v369_v1  ;;  %v349_v3 = vld [vmem:[%s482_s2 + $0x28] sm:$0xff]  ;;  %v347_v12 = vld [vmem:[%s482_s2 + $0x18] sm:$0xff]  ;;  %361 = vrcp.f32 %v370_v14 }
   0x2   :  { %v26_v2 = vmul.f32 %v404_v0, %v404_v0  ;;  %v355_v4 = vld [vmem:[%s483_s3 + $0x28] sm:$0xff]  ;;  %v123_v6 = vsel %vm103_vm1, %v349_v3, 0  ;;  %v348_v8 = vld [vmem:[%s482_s2 + $0x20] sm:$0xff]  ;;  %v353_v13 = vld [vmem:[%s483_s3 + $0x18] sm:$0xff]  ;;  %v117_v15 = vsel %vm103_vm1, %v347_v12, 0  ;;  %vm57_vm6 = vcmask 253952  }
   0x3   :  { %v196_v7 = vsel %vm103_vm1, %v355_v4, 0  ;;  %127 = vmatpush.bf16.xpose.msra.mxu0 %v123_v6  ;;  %v354_v9 = vld [vmem:[%s483_s3 + $0x20] sm:$0xff]  ;;  %v120_v10 = vsel %vm103_vm1, %v348_v8, 0  ;;  %v190_v16 = vsel %vm103_vm1, %v353_v13, 0  ;;  %v346_v18 = vld [vmem:[%s482_s2 + $0x10] sm:$0xff]  ;;  %v345_v24 = vld [vmem:[%s482_s2 + $0x8] sm:$0xff] }
   0x4   :  { %v28_v5 = vsel %vm27_vm0, %v26_v2, 0.0  ;;  %200 = vmatpush.bf16.xpose.msra.mxu1 %v196_v7  ;;  %v193_v11 = vsel %vm103_vm1, %v354_v9, 0  ;;  %v352_v19 = vld [vmem:[%s483_s3 + $0x10] sm:$0xff]  ;;  %v114_v20 = vsel %vm103_vm1, %v346_v18, 0  ;;  %v351_v25 = vld [vmem:[%s483_s3 + $0x8] sm:$0xff]  ;;  %v111_v26 = vsel %vm103_vm1, %v345_v24, 0 }
   0x5   :  { %29 = vadd.xlane.f32.xlu0 %v28_v5  ;;  %v187_v21 = vsel %vm103_vm1, %v352_v19, 0  ;;  %v184_v27 = vsel %vm103_vm1, %v351_v25, 0  ;;  %v344_v30 = vld [vmem:[%s482_s2] sm:$0xff]  ;;  %v357_v50 = vld [vmem:[%s485_s4 + $0x8] sm:$0xff]  ;;  %vm248_vm7 = vcmask 785408  }
   0x6   :  { %v350_v31 = vld [vmem:[%s483_s3] sm:$0xff]  ;;  %v108_v32 = vsel %vm103_vm1, %v344_v30, 0  ;;  %v256_v51 = vsel %vm248_vm7, %v357_v50, 0 }
   0x7   :  { %v362_v17 = vpop.eup %361  ;;  %v181_v33 = vsel %vm103_vm1, %v350_v31, 0  ;;  %v360_v44 = vld [vmem:[%s484_s1] ss:$0 sm:$0xff]  ;;  %264 = vmatpush.bf16.xpose.msra.mxu2 %v256_v51 }
   0x8   :  { %v32_v22 = vmul.f32 32.0, %v362_v17  ;;  %vm36_vm2 = vweird.f32 %v362_v17  ;;  %v356_v52 = vld [vmem:[%s485_s4] sm:$0xff] }
   0x9   :  { %v253_v53 = vsel %vm248_vm7, %v356_v52, 0  ;;  %v278_v14 = vld [vmem:[%s481_s0] sm:$0x3] }
   0xa   :  { %v33_v23 = vsub.f32 1.0, %v32_v22 }
   0xb   :  { %128 = vmatpush.bf16.xpose.msra.mxu0 %v120_v10 }
   0xc   :  { %201 = vmatpush.bf16.xpose.msra.mxu1 %v193_v11  ;;  %v34_v28 = vmul.f32 %v362_v17, %v33_v23  ;;  %v232_v11 = vld [vmem:[#allocation2] sm:$0x3] }
   0xe   :  { %v35_v29 = vadd.f32 %v362_v17, %v34_v28 }
   0xf   :  { %265 = vmatpush.bf16.xpose.msra.mxu2 %v253_v53 }
  0x10   :  { %v37_v34 = vsel %vm36_vm2, %v362_v17, %v35_v29 }
  0x13   :  { %129 = vmatpush.bf16.xpose.msra.mxu0 %v117_v15 }
  0x14   :  { %202 = vmatpush.bf16.xpose.msra.mxu1 %v190_v16 }
  0x1b   :  { %130 = vmatpush.bf16.xpose.msra.mxu0 %v114_v20 }
  0x1c   :  { %203 = vmatpush.bf16.xpose.msra.mxu1 %v187_v21 }
  0x23   :  { %131 = vmatpush.bf16.xpose.msra.mxu0 %v111_v26 }
  0x24   :  { %204 = vmatpush.bf16.xpose.msra.mxu1 %v184_v27 }
  0x2b   :  { %132 = vmatpush.bf16.xpose.msra.mxu0 %v108_v32 }
  0x2c   :  { %205 = vmatpush.bf16.xpose.msra.mxu1 %v181_v33 }
  0x78   :  { %v30_v35 = vpop.xlane.xlu0 %29 }
  0x79   :  { %v38_v36 = vmul.f32 %v37_v34, %v30_v35 }
  0x7b   :  { %v39_v37 = vadd.f32 1e-05, %v38_v36 }
  0x7d   :  { %363 = vrsqrt.f32 %v39_v37  ;;  %vm46_vm4 = vweird.f32 %v39_v37 }
  0x83   :  { %v364_v38 = vpop.eup %363 }
  0x84   :  { %v41_v39 = vmul.f32 %v364_v38, %v39_v37  ;;  %vm47_vm3 = vweird.f32 %v364_v38 }
  0x85   :  { %vm48_vm5 = vmor %vm46_vm4, %vm47_vm3 }
  0x86   :  { %v42_v40 = vmul.f32 %v364_v38, %v41_v39 }
  0x88   :  { %v43_v41 = vmul.f32 0.5, %v42_v40 }
  0x8a   :  { %v44_v42 = vsub.f32 1.5, %v43_v41 }
  0x8c   :  { %v45_v43 = vmul.f32 %v364_v38, %v44_v42 }
  0x8e   :  { %v49_v45 = vsel %vm48_vm5, %v364_v38, %v45_v43 }
  0x8f   :  { %v50_v46 = vmul.f32 %v49_v45, %v404_v0 }
  0x91   :  { %v55_v47 = vmul.f32 %v360_v44, %v50_v46 }
  0x93   :  { %v56_v48 = vpack.c.bf16 %v55_v47, %v55_v47 }
  0x95   :  { %58 = vst.msk [vmem:[#allocation3] sm:$0x1] %vm57_vm6, %v56_v48 }
  0x9c   :  { %v60_v49 = vld [vmem:[#allocation3] sm:$0x1] }
  0x9d   :  { %309 = vmatmul.msk.bf16.vlgmr.msra.gmra.mxu0 %vm103_vm1, %v60_v49  ;;  %334 = vmatmul.msk.bf16.vlgmr.msra.gmra.mxu1 %vm103_vm1, %v60_v49 }
 0x11a   :  { %v134_v54 = vpop.f32.mrf.mxu0  ;;  %v207_v55 = vpop.f32.mrf.mxu1 }
 0x11b   :  { %v211_v56 = vsub.f32 0.0, %v134_v54 }
 0x11d   :  { %v212_v57 = vmul.f32 1.442695, %v211_v56 }
 0x11f   :  { %365 = vpow2.f32 %v212_v57 }
 0x122   :  { %v136_v58 = vpop.f32.mrf.mxu0  ;;  %v209_v59 = vpop.f32.mrf.mxu1 }
 0x125   :  { %v366_v60 = vpop.eup %365 }
 0x126   :  { %v214_v61 = vadd.f32 1.0, %v366_v60 }
 0x128   :  { %367 = vrcp.f32 %v214_v61  ;;  %v226_v1 = vand.u32 2147483648, %v214_v61  ;;  %v224_v3 = vand.u32 2147483647, %v214_v61  ;;  %vm220_vm9 = vweird.f32 %v214_v61 }
 0x12a   :  { %v227_v5 = vor.u32 1.1754944e-38, %v226_v1  ;;  %vm225_vm11 = vcmp.eq.f32.partialorder %v224_v3, 8.507059e+37 }
 0x12e   :  { %v368_v62 = vpop.eup %367 }
 0x12f   :  { %v216_v63 = vmul.f32 %v368_v62, %v214_v61  ;;  %vm221_vm8 = vweird.f32 %v368_v62 }
 0x130   :  { %vm222_vm10 = vmor %vm220_vm9, %vm221_vm8 }
 0x131   :  { %v217_v0 = vsub.f32 1.0, %v216_v63 }
 0x133   :  { %v218_v2 = vmul.f32 %v368_v62, %v217_v0 }
 0x135   :  { %v219_v4 = vadd.f32 %v368_v62, %v218_v2 }
 0x137   :  { %v223_v6 = vsel %vm222_vm10, %v368_v62, %v219_v4 }
 0x138   :  { %v228_v7 = vsel %vm225_vm11, %v227_v5, %v223_v6 }
 0x139   :  { %v230_v8 = vmul.f32 %v228_v7, %v134_v54 }
 0x13b   :  { %v231_v9 = vmul.f32 %v230_v8, %v207_v55 }
 0x13d   :  { %v233_v10 = vpack.c.bf16 %v231_v9, %v231_v9 }
 0x13f   :  { %343 = vmatmul.msk.bf16.vlgmr.msra.gmra.mxu2 %vm248_vm7, %v233_v10 }
 0x1c2   :  { %v267_v12 = vpop.f32.mrf.mxu2 }
 0x1c3   :  { %v271_v13 = vadd.f32 %v267_v12, %v232_v11 }
 0x1c5   :  { %273 = vst.msk [vmem:[#allocation2] sm:$0x3] %vm27_vm0, %v271_v13 }
 0x1ca   :  { %v269_v15 = vpop.f32.mrf.mxu2 }
 0x1cc   :  { %v277_v16 = vld [vmem:[#allocation2] sm:$0x3] }
 0x1cd   :  { %v279_v17 = vadd.f32 %v278_v14, %v277_v16 }
 0x1cf   :  { %280 = vst.msk [vmem:[%s486_s5] sm:$0x3] %vm27_vm0, %v279_v17 }

// kernel: fwd.18
= control target key start
LH: loop header
LB: loop body
LE: loop exit
PB: predicated region body
PF: predicated region fallthrough
CT: control target
= control target key end

     0   :  { %vm13_vm0 = vcmask 254976   ;;  %v55_v3 = vmov 32.0   ;;  %vm43_vm5 = vcmask 253952   ;;  %s80_s0 = inlined_call_operand.vmem [shape: f32[2,32], index: 0, kind: input, shape index: {}]   ;;  %s81_s1 = inlined_call_operand.vmem [shape: f32[1,32], index: 1, kind: input, shape index: {}]   ;;  %s82_s2 = inlined_call_operand.vmem [shape: bf16[2,32], index: 2, kind: output, shape index: {}]  }
   0x1   :  { %v11_v0 = vld [vmem:[%s80_s0] sm:$0x3]  ;;  %51 = vrcp.f32 %v55_v3 }
   0x2   :  { %v12_v1 = vmul.f32 %v11_v0, %v11_v0  ;;  %v50_v19 = vld [vmem:[%s81_s1] ss:$0 sm:$0xff] }
   0x4   :  { %v14_v2 = vsel %vm13_vm0, %v12_v1, 0.0 }
   0x5   :  { %15 = vadd.xlane.f32.xlu0 %v14_v2 }
   0x7   :  { %v52_v4 = vpop.eup %51 }
   0x8   :  { %v18_v5 = vmul.f32 32.0, %v52_v4  ;;  %vm22_vm1 = vweird.f32 %v52_v4 }
   0xa   :  { %v19_v6 = vsub.f32 1.0, %v18_v5 }
   0xc   :  { %v20_v7 = vmul.f32 %v52_v4, %v19_v6 }
   0xe   :  { %v21_v8 = vadd.f32 %v52_v4, %v20_v7 }
  0x10   :  { %v23_v9 = vsel %vm22_vm1, %v52_v4, %v21_v8 }
  0x78   :  { %v16_v10 = vpop.xlane.xlu0 %15 }
  0x79   :  { %v24_v11 = vmul.f32 %v23_v9, %v16_v10 }
  0x7b   :  { %v25_v12 = vadd.f32 1e-05, %v24_v11 }
  0x7d   :  { %53 = vrsqrt.f32 %v25_v12  ;;  %vm32_vm3 = vweird.f32 %v25_v12 }
  0x83   :  { %v54_v13 = vpop.eup %53 }
  0x84   :  { %v27_v14 = vmul.f32 %v54_v13, %v25_v12  ;;  %vm33_vm2 = vweird.f32 %v54_v13 }
  0x85   :  { %vm34_vm4 = vmor %vm32_vm3, %vm33_vm2 }
  0x86   :  { %v28_v15 = vmul.f32 %v54_v13, %v27_v14 }
  0x88   :  { %v29_v16 = vmul.f32 0.5, %v28_v15 }
  0x8a   :  { %v30_v17 = vsub.f32 1.5, %v29_v16 }
  0x8c   :  { %v31_v18 = vmul.f32 %v54_v13, %v30_v17 }
  0x8e   :  { %v35_v20 = vsel %vm34_vm4, %v54_v13, %v31_v18 }
  0x8f   :  { %v36_v21 = vmul.f32 %v35_v20, %v11_v0 }
  0x91   :  { %v41_v22 = vmul.f32 %v50_v19, %v36_v21 }
  0x93   :  { %v42_v23 = vpack.c.bf16 %v41_v22, %v41_v22 }
  0x95   :  { %44 = vst.msk [vmem:[%s82_s2] sm:$0x1] %vm43_vm5, %v42_v23 }

// kernel: fwd.19
= control target key start
LH: loop header
LB: loop body
LE: loop exit
PB: predicated region body
PF: predicated region fallthrough
CT: control target
= control target key end

     0   :  { %vm49_vm0 = vcmask 261120   ;;  %s194_s0 = inlined_call_operand.vmem [shape: bf16[2,32], index: 0, kind: input, shape index: {}]   ;;  %s195_s1 = inlined_call_operand.vmem [shape: bf16[64,32], index: 1, kind: input, shape index: {}]   ;;  %s196_s2 = inlined_call_operand.hbm [shape: f32[2,64], index: 2, kind: output, shape index: {}]  }
   0x1   :  { %v122_v0 = vld [vmem:[%s195_s1 + $0x18] sm:$0xff] }
   0x2   :  { %7 = vsyncpa [#allocation4], 0  ;;  %v63_v1 = vsel %vm49_vm0, %v122_v0, 0  ;;  %vm17_vm1 = vcmask 517120   ;;  %v121_v2 = vld [vmem:[%s195_s1 + $0x10] sm:$0xff]  ;;  %v151_v3 = vmov 0.0  }
   0x3   :  { %69 = vmatpush.bf16.xpose.msra.mxu0 %v63_v1  ;;  %18 = vst.msk [vmem:[#allocation2] sm:$0x3] %vm17_vm1, %v151_v3  ;;  %v60_v4 = vsel %vm49_vm0, %v121_v2, 0  ;;  %v120_v5 = vld [vmem:[%s195_s1 + $0x8] sm:$0xff]  ;;  %v119_v7 = vld [vmem:[%s195_s1] sm:$0xff]  ;;  %s152_s19 = smov [#allocation3]  }
   0x4   :  { %v57_v6 = vsel %vm49_vm0, %v120_v5, 0  ;;  %v54_v8 = vsel %vm49_vm0, %v119_v7, 0  ;;  %v20_v9 = vld [vmem:[%s194_s0] sm:$0x1]  ;;  %s91_s20 = sshll.u32 %s152_s19, 4  ;;  %s93_s1 = sshll.u32 %s196_s2, 4  ;;  %s92_s20 = int_to_ptr.vmem [resolvable:$true] %s91_s20  ;;  %s94_s1 = int_to_ptr.hbm [resolvable:$true] %s93_s1 }
   0xa   :  { %v19_v10 = vld [vmem:[#allocation2] sm:$0x3] }
   0xb   :  { %70 = vmatpush.bf16.xpose.msra.mxu0 %v60_v4 }
  0x13   :  { %71 = vmatpush.bf16.xpose.msra.mxu0 %v57_v6 }
  0x1b   :  { %72 = vmatpush.bf16.xpose.msra.mxu0 %v54_v8 }
  0x22   :  { %118 = vmatmul.msk.bf16.vlgmr.msra.gmra.mxu0 %vm49_vm0, %v20_v9 }
  0x9f   :  { %v74_v11 = vpop.f32.mrf.mxu0 }
  0xa0   :  { %v78_v12 = vadd.f32 %v74_v11, %v19_v10 }
  0xa2   :  { %80 = vst.msk [vmem:[#allocation2] sm:$0x3] %vm17_vm1, %v78_v12 }
  0xa7   :  { %v76_v13 = vpop.f32.mrf.mxu0 }
  0xa9   :  { %v84_v14 = vld [vmem:[#allocation2] sm:$0x3] }
  0xaa   :  { %85 = vst.msk [vmem:[#allocation3] sm:$0x3] %vm17_vm1, %v84_v14 }
  0xab   :  { %96 = dma.vmem_to_hbm [thread:$0]  %s92_s20, 32, %s94_s1, [#allocation4]  }
  0xac   :  { %149 = dma.done.wait [#allocation4], 32  }
  0xad   :  { %150 = vsyncadd [#allocation4], 4294967264 }
  0xae   :  { %101 = vsyncpa [#allocation4], 1 }

</bundles_post_ra>
